<compile_context>
chip_gen: v7x
topology: tpu7x:2x2x1
jax: 0.10.0
libtpu: 0.0.40
codegen_flags: <defaults>
</compile_context>

<pallas_src>
import jax
import jax.numpy as jnp
from jax.experimental import pallas as pl
from jax.experimental.pallas import tpu as pltpu


def _round_up(x, m):
    return (x + m - 1) // m * m


def _pick_tm(m, max_tm, unit=16):
    """Row-tile size: as large as allowed, but aim for >=2 grid steps (v7x megacore)."""
    tm = _round_up(pl.cdiv(m, 2), unit)
    return max(unit, min(tm, max_tm))


_COMPILER_PARAMS = pltpu.CompilerParams(
    dimension_semantics=("parallel",),
    vmem_limit_bytes=48 * 1024 * 1024,   # > v5e 16MiB scoped default, < v7x 64MiB physical
)


# ----------------------------------------------------------------------------
# Pallas kernels
# ----------------------------------------------------------------------------
def _conv_bn_relu_pool_kernel(p_ref, w_ref, b_ref, o_ref):
    # p_ref: (4, TM, K)  bf16 im2col patches; axis 0 = position in the 2x2 pool window,
    #                    axis 1 = pooled output pixels.
    # w_ref: (K, Cout)   bf16 conv weights with the eval-mode BN scale folded in.
    # b_ref: (1, Cout)   f32 folded conv-bias / BN bias.
    # o_ref: (TM, Cout)  bf16 pooled activations.
    tm = p_ref.shape[1]
    k = p_ref.shape[2]
    p = p_ref[...].reshape(4 * tm, k)                 # free merge of leading dims
    acc = jnp.dot(p, w_ref[...], preferred_element_type=jnp.float32)   # one MXU push
    z = jnp.maximum(acc + b_ref[...], 0.0)            # folded BN + ReLU in f32
    y = jnp.maximum(jnp.maximum(z[0 * tm:1 * tm], z[1 * tm:2 * tm]),
                    jnp.maximum(z[2 * tm:3 * tm], z[3 * tm:4 * tm]))    # 2x2 max-pool
    o_ref[...] = y.astype(o_ref.dtype)


def _linear_kernel(x_ref, w_ref, b_ref, o_ref):
    acc = jnp.dot(x_ref[...], w_ref[...], preferred_element_type=jnp.float32)
    o_ref[...] = (acc + b_ref[...]).astype(o_ref.dtype)


# ----------------------------------------------------------------------------
# Pallas wrappers (tiling / padding)
# ----------------------------------------------------------------------------
def conv_bn_relu_pool(patches4, w_mat, bias):
    """Fused Conv(im2col matmul) + BN(eval) + ReLU + MaxPool2 over pre-grouped patches."""
    _, M, K = patches4.shape
    cout = w_mat.shape[1]

    tm = _pick_tm(M, 2048)                  # layer2 @ tm=2048: ~14 MiB working set
    mp = _round_up(M, tm)
    if mp != M:
        patches4 = jnp.pad(patches4, ((0, 0), (0, mp - M), (0, 0)))

    out = pl.pallas_call(
        _conv_bn_relu_pool_kernel,
        out_shape=jax.ShapeDtypeStruct((mp, cout), jnp.bfloat16),
        grid=(mp // tm,),
        in_specs=[
            pl.BlockSpec((4, tm, K), lambda i: (0, i, 0)),
            pl.BlockSpec((K, cout), lambda i: (0, 0)),
            pl.BlockSpec((1, cout), lambda i: (0, 0)),
        ],
        out_specs=pl.BlockSpec((tm, cout), lambda i: (i, 0)),
        compiler_params=_COMPILER_PARAMS,
    )(patches4, w_mat, bias)
    return out[:M]


def linear(x, w, b):
    """x @ w + b, output padded to 128 lanes in-kernel, sliced back in the wrapper."""
    M, K = x.shape
    nout = w.shape[1]
    npad = 128                              # lane-dense output -> unmasked stores
    w_p = jnp.zeros((K, npad), jnp.bfloat16).at[:, :nout].set(w.astype(jnp.bfloat16))
    b_p = jnp.zeros((1, npad), jnp.float32).at[0, :nout].set(b.astype(jnp.float32))

    tm = _pick_tm(M, 1024)
    mp = _round_up(M, tm)
    x_p = x.astype(jnp.bfloat16)
    if mp != M:
        x_p = jnp.pad(x_p, ((0, mp - M), (0, 0)))

    out = pl.pallas_call(
        _linear_kernel,
        out_shape=jax.ShapeDtypeStruct((mp, npad), jnp.float32),
        grid=(mp // tm,),
        in_specs=[
            pl.BlockSpec((tm, K), lambda i: (i, 0)),
            pl.BlockSpec((K, npad), lambda i: (0, 0)),
            pl.BlockSpec((1, npad), lambda i: (0, 0)),
        ],
        out_specs=pl.BlockSpec((tm, npad), lambda i: (i, 0)),
        compiler_params=_COMPILER_PARAMS,
    )(x_p, w_p, b_p)
    return out[:M, :nout]


# ----------------------------------------------------------------------------
# Plain-JAX glue (patch building / parameter folding)
# ----------------------------------------------------------------------------
def pooled_patches(x_nhwc, k=5, pad=2):
    """5x5 'same' im2col patches grouped by 2x2 pool window (dtype-preserving; call in bf16).

    Returns (4, N*Ho*Wo, k*k*C); axis 0 index q = 2*(h%2) + (w%2) of the conv output
    position inside the pool window; patch-vector order is (dy, dx, cin).
    """
    N, H, W, C = x_nhwc.shape
    ho, wo, kk = H // 2, W // 2, k * k * C
    xp = jnp.pad(x_nhwc, ((0, 0), (pad, pad), (pad, pad), (0, 0)))
    cols = [xp[:, dy:dy + H, dx:dx + W, :] for dy in range(k) for dx in range(k)]
    patches = jnp.concatenate(cols, axis=-1)                  # (N, H, W, kk)
    patches = patches.reshape(N, ho, 2, wo, 2, kk)
    patches = jnp.transpose(patches, (2, 4, 0, 1, 3, 5))      # (2, 2, N, Ho, Wo, kk)
    return patches.reshape(4, N * ho * wo, kk)


def fold_bn(conv_w, conv_b, gamma, beta, mean, var, eps=1e-5):
    """Fold eval-mode BatchNorm (scale into weights) + conv bias into (W_bf16, bias_f32).

    conv_w is PyTorch layout (Cout, Cin, KH, KW); returned matrix is (KH*KW*Cin, Cout),
    matching the (dy, dx, cin) patch ordering.
    """
    cout = conv_w.shape[0]
    w_mat = jnp.transpose(conv_w, (2, 3, 1, 0)).reshape(-1, cout)
    s = gamma / jnp.sqrt(var + eps)
    w_fold = (w_mat * s[None, :]).astype(jnp.bfloat16)        # scale folded into weights
    bias = ((conv_b - mean) * s + beta).reshape(1, cout).astype(jnp.float32)
    return w_fold, bias


def init_params(key):
    keys = jax.random.split(key, 14)
    p = {}
    p["conv1_w"] = 0.10 * jax.random.normal(keys[0], (16, 1, 5, 5), jnp.float32)
    p["conv1_b"] = 0.10 * jax.random.normal(keys[1], (16,), jnp.float32)
    p["bn1_gamma"] = 1.0 + 0.1 * jax.random.normal(keys[2], (16,), jnp.float32)
    p["bn1_beta"] = 0.1 * jax.random.normal(keys[3], (16,), jnp.float32)
    p["bn1_mean"] = 0.1 * jax.random.normal(keys[4], (16,), jnp.float32)
    p["bn1_var"] = jax.random.uniform(keys[5], (16,), jnp.float32, 0.5, 1.5)

    p["conv2_w"] = 0.05 * jax.random.normal(keys[6], (32, 16, 5, 5), jnp.float32)
    p["conv2_b"] = 0.05 * jax.random.normal(keys[7], (32,), jnp.float32)
    p["bn2_gamma"] = 1.0 + 0.1 * jax.random.normal(keys[8], (32,), jnp.float32)
    p["bn2_beta"] = 0.1 * jax.random.normal(keys[9], (32,), jnp.float32)
    p["bn2_mean"] = 0.1 * jax.random.normal(keys[10], (32,), jnp.float32)
    p["bn2_var"] = jax.random.uniform(keys[11], (32,), jnp.float32, 0.5, 1.5)

    # PyTorch fc.weight is (10, 32*7*7) flattened in (c, h, w) order (NCHW view).
    # Our activations are NHWC, so permute the conceptual (10, C, H, W) weight to
    # (10, H, W, C) before flattening so the kernel matches PyTorch semantics.
    # (Apply the same permutation when loading real PyTorch fc weights.)
    w_fc = 0.05 * jax.random.normal(keys[12], (10, 32, 7, 7), jnp.float32)
    p["fc_w"] = jnp.transpose(w_fc, (0, 2, 3, 1)).reshape(10, -1).T   # (1568, 10)
    p["fc_b"] = 0.05 * jax.random.normal(keys[13], (10,), jnp.float32)
    return p


def fashion_mnist_cnn_forward(x_nchw, params):
    # NCHW (PyTorch) -> NHWC, cast to bf16 up front so the whole patch-build path
    # (XLA pad/concat/transpose + HBM patch arrays) is bf16 end-to-end.
    x = jnp.transpose(x_nchw, (0, 2, 3, 1)).astype(jnp.bfloat16)
    N, H, W, _ = x.shape

    # layer1: Conv(1->16, 5x5, pad=2) + BN(eval) + ReLU + MaxPool(2), fused kernel
    w1, b1 = fold_bn(params["conv1_w"], params["conv1_b"], params["bn1_gamma"],
                     params["bn1_beta"], params["bn1_mean"], params["bn1_var"])
    y = conv_bn_relu_pool(pooled_patches(x), w1, b1)
    y = y.reshape(N, H // 2, W // 2, 16)                  # (N, 14, 14, 16) bf16

    # layer2: Conv(16->32, 5x5, pad=2) + BN(eval) + ReLU + MaxPool(2), fused kernel
    w2, b2 = fold_bn(params["conv2_w"], params["conv2_b"], params["bn2_gamma"],
                     params["bn2_beta"], params["bn2_mean"], params["bn2_var"])
    z = conv_bn_relu_pool(pooled_patches(y), w2, b2)
    z = z.reshape(N, H // 4, W // 4, 32)                  # (N, 7, 7, 32) bf16

    # fc: flatten (NHWC; fc weights were permuted to match PyTorch's NCHW flatten)
    feat = z.reshape(N, -1)                               # (N, 1568) bf16
    return linear(feat, params["fc_w"], params["fc_b"])   # (N, 10) f32


if __name__ == "__main__":
    key = jax.random.PRNGKey(0)
    pkey, xkey = jax.random.split(key)
    params = init_params(pkey)
    # FashionMNIST input (batch=2), NCHW like PyTorch: (2, 1, 28, 28)
    x = jax.random.normal(xkey, (2, 1, 28, 28), jnp.float32)
    out = jax.jit(fashion_mnist_cnn_forward)(x, params)
    out = jax.block_until_ready(out)
    assert out.shape == (2, 10) and out.dtype == jnp.float32
    print("KERNEL_OK")
</pallas_src>

<mosaic_0001>
module attributes {stable_mosaic.version = 11 : i64} {
  func.func @_conv_bn_relu_pool_kernel(%arg0: i32, %arg1: memref<4x208x25xbf16, #tpu.memory_space<vmem>>, %arg2: memref<25x16xbf16, #tpu.memory_space<vmem>>, %arg3: memref<1x16xf32, #tpu.memory_space<vmem>>, %arg4: memref<208x16xbf16, #tpu.memory_space<vmem>>) attributes {dimension_semantics = [#tpu.dimension_semantics<parallel>], iteration_bounds = array<i64: 2>, scalar_prefetch = 0 : i64, scratch_operands = 0 : i64, tpu.core_type = #tpu.core_type<tc>, window_params = [{transform_indices = @transform_0, window_bounds = array<i64: 4, 208, 25>}, {pipeline_mode = #tpu.pipeline_mode<synchronous>, transform_indices = @transform_1, window_bounds = array<i64: 25, 16>}, {pipeline_mode = #tpu.pipeline_mode<synchronous>, transform_indices = @transform_2, window_bounds = array<i64: 1, 16>}, {transform_indices = @transform_3, window_bounds = array<i64: 208, 16>}]} {
    %c0 = arith.constant 0 : index
    %c0_0 = arith.constant 0 : index
    %c0_1 = arith.constant 0 : index
    %0 = vector.load %arg1[%c0, %c0_0, %c0_1] : memref<4x208x25xbf16, #tpu.memory_space<vmem>>, vector<4x208x25xbf16>
    %1 = vector.shape_cast %0 : vector<4x208x25xbf16> to vector<832x25xbf16>
    %c0_2 = arith.constant 0 : index
    %c0_3 = arith.constant 0 : index
    %2 = vector.load %arg2[%c0_2, %c0_3] : memref<25x16xbf16, #tpu.memory_space<vmem>>, vector<25x16xbf16>
    %cst = arith.constant dense<0.000000e+00> : vector<832x16xf32>
    %3 = tpu.matmul %1, %2, %cst {dimension_numbers = #tpu.dot_dimension_numbers<[1], [0], [0], [1], [0, 0, 1, 1], [], []>} : vector<832x25xbf16>, vector<25x16xbf16>, vector<832x16xf32> -> vector<832x16xf32>
    %c0_4 = arith.constant 0 : index
    %c0_5 = arith.constant 0 : index
    %4 = vector.load %arg3[%c0_4, %c0_5] : memref<1x16xf32, #tpu.memory_space<vmem>>, vector<1x16xf32>
    %5 = vector.broadcast %4 : vector<1x16xf32> to vector<832x16xf32>
    %6 = arith.addf %3, %5 : vector<832x16xf32>
    %cst_6 = arith.constant 0.000000e+00 : f32
    %7 = vector.broadcast %cst_6 : f32 to vector<832x16xf32>
    %8 = arith.maximumf %6, %7 : vector<832x16xf32>
    %9 = vector.extract_strided_slice %8 {offsets = [0, 0], sizes = [208, 16], strides = [1, 1]} : vector<832x16xf32> to vector<208x16xf32>
    %10 = vector.extract_strided_slice %8 {offsets = [208, 0], sizes = [208, 16], strides = [1, 1]} : vector<832x16xf32> to vector<208x16xf32>
    %11 = arith.maximumf %9, %10 : vector<208x16xf32>
    %12 = vector.extract_strided_slice %8 {offsets = [416, 0], sizes = [208, 16], strides = [1, 1]} : vector<832x16xf32> to vector<208x16xf32>
    %13 = vector.extract_strided_slice %8 {offsets = [624, 0], sizes = [208, 16], strides = [1, 1]} : vector<832x16xf32> to vector<208x16xf32>
    %14 = arith.maximumf %12, %13 : vector<208x16xf32>
    %15 = arith.maximumf %11, %14 : vector<208x16xf32>
    %16 = arith.truncf %15 : vector<208x16xf32> to vector<208x16xbf16>
    %c0_7 = arith.constant 0 : index
    %c0_8 = arith.constant 0 : index
    %17 = vector.load %arg4[%c0_7, %c0_8] : memref<208x16xbf16, #tpu.memory_space<vmem>>, vector<208x16xbf16>
    tpu.vector_store %arg4[%c0_7, %c0_8], %16 {strides = array<i32>} : memref<208x16xbf16, #tpu.memory_space<vmem>>, vector<208x16xbf16>,
    return
  }
  func.func @transform_0(%arg0: i32) -> (i32, i32, i32) {
    %c0_i32 = arith.constant 0 : i32
    %c0_i32_0 = arith.constant 0 : i32
    %c0_i32_1 = arith.constant 0 : i32
    return %c0_i32, %arg0, %c0_i32_0 : i32, i32, i32
  }
  func.func @transform_1(%arg0: i32) -> (i32, i32) {
    %c0_i32 = arith.constant 0 : i32
    %c0_i32_0 = arith.constant 0 : i32
    %c0_i32_1 = arith.constant 0 : i32
    return %c0_i32, %c0_i32_0 : i32, i32
  }
  func.func @transform_2(%arg0: i32) -> (i32, i32) {
    %c0_i32 = arith.constant 0 : i32
    %c0_i32_0 = arith.constant 0 : i32
    %c0_i32_1 = arith.constant 0 : i32
    return %c0_i32, %c0_i32_0 : i32, i32
  }
  func.func @transform_3(%arg0: i32) -> (i32, i32) {
    %c0_i32 = arith.constant 0 : i32
    %c0_i32_0 = arith.constant 0 : i32
    return %arg0, %c0_i32 : i32, i32
  }
}

module attributes {stable_mosaic.version = 11 : i64} {
  func.func @_conv_bn_relu_pool_kernel(%arg0: i32, %arg1: memref<4x64x400xbf16, #tpu.memory_space<vmem>>, %arg2: memref<400x32xbf16, #tpu.memory_space<vmem>>, %arg3: memref<1x32xf32, #tpu.memory_space<vmem>>, %arg4: memref<64x32xbf16, #tpu.memory_space<vmem>>) attributes {dimension_semantics = [#tpu.dimension_semantics<parallel>], iteration_bounds = array<i64: 2>, scalar_prefetch = 0 : i64, scratch_operands = 0 : i64, tpu.core_type = #tpu.core_type<tc>, window_params = [{transform_indices = @transform_0, window_bounds = array<i64: 4, 64, 400>}, {pipeline_mode = #tpu.pipeline_mode<synchronous>, transform_indices = @transform_1, window_bounds = array<i64: 400, 32>}, {pipeline_mode = #tpu.pipeline_mode<synchronous>, transform_indices = @transform_2, window_bounds = array<i64: 1, 32>}, {transform_indices = @transform_3, window_bounds = array<i64: 64, 32>}]} {
    %c0 = arith.constant 0 : index
    %c0_0 = arith.constant 0 : index
    %c0_1 = arith.constant 0 : index
    %0 = vector.load %arg1[%c0, %c0_0, %c0_1] : memref<4x64x400xbf16, #tpu.memory_space<vmem>>, vector<4x64x400xbf16>
    %1 = vector.shape_cast %0 : vector<4x64x400xbf16> to vector<256x400xbf16>
    %c0_2 = arith.constant 0 : index
    %c0_3 = arith.constant 0 : index
    %2 = vector.load %arg2[%c0_2, %c0_3] : memref<400x32xbf16, #tpu.memory_space<vmem>>, vector<400x32xbf16>
    %cst = arith.constant dense<0.000000e+00> : vector<256x32xf32>
    %3 = tpu.matmul %1, %2, %cst {dimension_numbers = #tpu.dot_dimension_numbers<[1], [0], [0], [1], [0, 0, 1, 1], [], []>} : vector<256x400xbf16>, vector<400x32xbf16>, vector<256x32xf32> -> vector<256x32xf32>
    %c0_4 = arith.constant 0 : index
    %c0_5 = arith.constant 0 : index
    %4 = vector.load %arg3[%c0_4, %c0_5] : memref<1x32xf32, #tpu.memory_space<vmem>>, vector<1x32xf32>
    %5 = vector.broadcast %4 : vector<1x32xf32> to vector<256x32xf32>
    %6 = arith.addf %3, %5 : vector<256x32xf32>
    %cst_6 = arith.constant 0.000000e+00 : f32
    %7 = vector.broadcast %cst_6 : f32 to vector<256x32xf32>
    %8 = arith.maximumf %6, %7 : vector<256x32xf32>
    %9 = vector.extract_strided_slice %8 {offsets = [0, 0], sizes = [64, 32], strides = [1, 1]} : vector<256x32xf32> to vector<64x32xf32>
    %10 = vector.extract_strided_slice %8 {offsets = [64, 0], sizes = [64, 32], strides = [1, 1]} : vector<256x32xf32> to vector<64x32xf32>
    %11 = arith.maximumf %9, %10 : vector<64x32xf32>
    %12 = vector.extract_strided_slice %8 {offsets = [128, 0], sizes = [64, 32], strides = [1, 1]} : vector<256x32xf32> to vector<64x32xf32>
    %13 = vector.extract_strided_slice %8 {offsets = [192, 0], sizes = [64, 32], strides = [1, 1]} : vector<256x32xf32> to vector<64x32xf32>
    %14 = arith.maximumf %12, %13 : vector<64x32xf32>
    %15 = arith.maximumf %11, %14 : vector<64x32xf32>
    %16 = arith.truncf %15 : vector<64x32xf32> to vector<64x32xbf16>
    %c0_7 = arith.constant 0 : index
    %c0_8 = arith.constant 0 : index
    %17 = vector.load %arg4[%c0_7, %c0_8] : memref<64x32xbf16, #tpu.memory_space<vmem>>, vector<64x32xbf16>
    tpu.vector_store %arg4[%c0_7, %c0_8], %16 {strides = array<i32>} : memref<64x32xbf16, #tpu.memory_space<vmem>>, vector<64x32xbf16>,
    return
  }
  func.func @transform_0(%arg0: i32) -> (i32, i32, i32) {
    %c0_i32 = arith.constant 0 : i32
    %c0_i32_0 = arith.constant 0 : i32
    %c0_i32_1 = arith.constant 0 : i32
    return %c0_i32, %arg0, %c0_i32_0 : i32, i32, i32
  }
  func.func @transform_1(%arg0: i32) -> (i32, i32) {
    %c0_i32 = arith.constant 0 : i32
    %c0_i32_0 = arith.constant 0 : i32
    %c0_i32_1 = arith.constant 0 : i32
    return %c0_i32, %c0_i32_0 : i32, i32
  }
  func.func @transform_2(%arg0: i32) -> (i32, i32) {
    %c0_i32 = arith.constant 0 : i32
    %c0_i32_0 = arith.constant 0 : i32
    %c0_i32_1 = arith.constant 0 : i32
    return %c0_i32, %c0_i32_0 : i32, i32
  }
  func.func @transform_3(%arg0: i32) -> (i32, i32) {
    %c0_i32 = arith.constant 0 : i32
    %c0_i32_0 = arith.constant 0 : i32
    return %arg0, %c0_i32 : i32, i32
  }
}

module attributes {stable_mosaic.version = 11 : i64} {
  func.func @_linear_kernel(%arg0: i32, %arg1: memref<16x1568xbf16, #tpu.memory_space<vmem>>, %arg2: memref<1568x128xbf16, #tpu.memory_space<vmem>>, %arg3: memref<1x128xf32, #tpu.memory_space<vmem>>, %arg4: memref<16x128xf32, #tpu.memory_space<vmem>>) attributes {dimension_semantics = [#tpu.dimension_semantics<parallel>], iteration_bounds = array<i64: 1>, scalar_prefetch = 0 : i64, scratch_operands = 0 : i64, tpu.core_type = #tpu.core_type<tc>, window_params = [{transform_indices = @transform_0, window_bounds = array<i64: 16, 1568>}, {pipeline_mode = #tpu.pipeline_mode<synchronous>, transform_indices = @transform_1, window_bounds = array<i64: 1568, 128>}, {pipeline_mode = #tpu.pipeline_mode<synchronous>, transform_indices = @transform_2, window_bounds = array<i64: 1, 128>}, {transform_indices = @transform_3, window_bounds = array<i64: 16, 128>}]} {
    %c0 = arith.constant 0 : index
    %c0_0 = arith.constant 0 : index
    %0 = vector.load %arg1[%c0, %c0_0] : memref<16x1568xbf16, #tpu.memory_space<vmem>>, vector<16x1568xbf16>
    %c0_1 = arith.constant 0 : index
    %c0_2 = arith.constant 0 : index
    %1 = vector.load %arg2[%c0_1, %c0_2] : memref<1568x128xbf16, #tpu.memory_space<vmem>>, vector<1568x128xbf16>
    %cst = arith.constant dense<0.000000e+00> : vector<16x128xf32>
    %2 = tpu.matmul %0, %1, %cst {dimension_numbers = #tpu.dot_dimension_numbers<[1], [0], [0], [1], [0, 0, 1, 1], [], []>} : vector<16x1568xbf16>, vector<1568x128xbf16>, vector<16x128xf32> -> vector<16x128xf32>
    %c0_3 = arith.constant 0 : index
    %c0_4 = arith.constant 0 : index
    %3 = vector.load %arg3[%c0_3, %c0_4] : memref<1x128xf32, #tpu.memory_space<vmem>>, vector<1x128xf32>
    %4 = vector.broadcast %3 : vector<1x128xf32> to vector<16x128xf32>
    %5 = arith.addf %2, %4 : vector<16x128xf32>
    %c0_5 = arith.constant 0 : index
    %c0_6 = arith.constant 0 : index
    %6 = vector.load %arg4[%c0_5, %c0_6] : memref<16x128xf32, #tpu.memory_space<vmem>>, vector<16x128xf32>
    tpu.vector_store %arg4[%c0_5, %c0_6], %5 {strides = array<i32>} : memref<16x128xf32, #tpu.memory_space<vmem>>, vector<16x128xf32>,
    return
  }
  func.func @transform_0(%arg0: i32) -> (i32, i32) {
    %c0_i32 = arith.constant 0 : i32
    %c0_i32_0 = arith.constant 0 : i32
    return %arg0, %c0_i32 : i32, i32
  }
  func.func @transform_1(%arg0: i32) -> (i32, i32) {
    %c0_i32 = arith.constant 0 : i32
    %c0_i32_0 = arith.constant 0 : i32
    %c0_i32_1 = arith.constant 0 : i32
    return %c0_i32, %c0_i32_0 : i32, i32
  }
  func.func @transform_2(%arg0: i32) -> (i32, i32) {
    %c0_i32 = arith.constant 0 : i32
    %c0_i32_0 = arith.constant 0 : i32
    %c0_i32_1 = arith.constant 0 : i32
    return %c0_i32, %c0_i32_0 : i32, i32
  }
  func.func @transform_3(%arg0: i32) -> (i32, i32) {
    %c0_i32 = arith.constant 0 : i32
    %c0_i32_0 = arith.constant 0 : i32
    return %arg0, %c0_i32 : i32, i32
  }
}

</mosaic_0001>

<bundles_post_ra>
// kernel: fashion_mnist_cnn_forward.3
= control target key start
LH: loop header
LB: loop body
LE: loop exit
PB: predicated region body
PF: predicated region fallthrough
CT: control target
= control target key end

     0   :  { %s2463_s12 = smov 0   ;;  %s2465_s13 = smov 0   ;;  %s3209_s0 = inlined_call_operand.vmem [shape: bf16[4,416,25], index: 0, kind: input, shape index: {}]   ;;  %s3210_s1 = inlined_call_operand.vmem [shape: bf16[25,16], index: 1, kind: input, shape index: {}]   ;;  %s3211_s2 = inlined_call_operand.vmem [shape: f32[1,16], index: 2, kind: input, shape index: {}]   ;;  %s3212_s3 = inlined_call_operand.vmem [shape: bf16[416,16], index: 3, kind: output, shape index: {}]  }
   0x1   :  { %s2467_s14 = smov 0  }
   0x2 LB: > { %s2002_s15 = sadd.s32 4294967295, %s2440_s14   ;;  %s2480_s16 = sadd.s32 1, %s2440_s14   ;;  %s2440_s14 = sphi %s2467_s14, %s3282_s14   ;;  %s2436_s13 = sphi %s2465_s13, %s3281_s13   ;;  %s2432_s12 = sphi %s2463_s12, %s3280_s12  }
   0x3   : > { %s17_s17 = ssub.s32 %s2440_s14, %s2480_s16  ;;  %s20_s18 = sadd.s32 1, %s2436_s13 }
   0x4   : > { %p18_p0 = scmp.eq.s32.totalorder %s17_s17, 0  ;;  %p27_p1 = scmp.ne.s32.totalorder %s2436_s13, %s2432_s12 }
   0x5   : > { %p28_p2 = scmp.eq.s32.totalorder %s2440_s14, 0  ;;  %p2005_p4 = scmp.ge.s32.totalorder %s2440_s14, 2 }
   0x6   : > { %s2489_s19 = scalar_select %p18_p0, %s2436_s13, %s20_s18  }
   0x7   : > { %p29_p3 = por %p28_p2, %p27_p1  ;;  %127 = sbr.rel (%p2005_p4) target bundleno = 45 (0x2d), region = 24 }
   0xe   : > { %130 = sbr.rel (!%p29_p3) target bundleno = 45 (0x2d), region = 28  ;;  %s132_s20 = sand.u32 (%p29_p3), 1, %s2436_s13  }
   0xf   : > { %s2144_s21 = smul.u32 (%p29_p3), 104, %s2440_s14 }
  0x10   : > { %s2337_s22 = smul.u32 (%p29_p3), 416, %s132_s20 }
  0x11   : > { %s2497_s25 = scalar_lea.vmem (%p29_p3), %s3209_s0, %s2144_s21 }
  0x12   : > { %v153_v0 = vld [vmem:[%s2497_s25] sm:$0xff] (%p29_p3)   ;;  %v157_v1 = vld [vmem:[%s2497_s25 + $0x8] sm:$0xff] (%p29_p3)   ;;  %v161_v2 = vld [vmem:[%s2497_s25 + $0x10] sm:$0xff] (%p29_p3)   ;;  %s2502_s26 = scalar_lea.vmem (%p29_p3), [#allocation2], %s2337_s22 }
  0x13   : > { %154 = vst [vmem:[%s2502_s26] sm:$0xff] (%p29_p3), %v153_v0   ;;  %158 = vst [vmem:[%s2502_s26 + $0x8] sm:$0xff] (%p29_p3), %v157_v1   ;;  %v165_v3 = vld [vmem:[%s2497_s25 + $0x18] sm:$0xff] (%p29_p3)   ;;  %v169_v4 = vld [vmem:[%s2497_s25 + $0x20] sm:$0xff] (%p29_p3)  }
  0x14   : > { %162 = vst [vmem:[%s2502_s26 + $0x10] sm:$0xff] (%p29_p3), %v161_v2   ;;  %v173_v5 = vld [vmem:[%s2497_s25 + $0x28] sm:$0xff] (%p29_p3)   ;;  %166 = vst [vmem:[%s2502_s26 + $0x18] sm:$0xff] (%p29_p3), %v165_v3   ;;  %v177_v6 = vld [vmem:[%s2497_s25 + $0x30] sm:$0xff] (%p29_p3)  }
  0x15   : > { %170 = vst [vmem:[%s2502_s26 + $0x20] sm:$0xff] %v169_v4   ;;  %174 = vst [vmem:[%s2502_s26 + $0x28] sm:$0xff] %v173_v5   ;;  %v181_v7 = vld [vmem:[%s2497_s25 + $0x38] sm:$0xff]   ;;  %v185_v8 = vld [vmem:[%s2497_s25 + $0x40] sm:$0xff]  }
  0x16   : > { %178 = vst [vmem:[%s2502_s26 + $0x30] sm:$0xff] %v177_v6   ;;  %182 = vst [vmem:[%s2502_s26 + $0x38] sm:$0xff] %v181_v7   ;;  %v189_v9 = vld [vmem:[%s2497_s25 + $0x48] sm:$0xff]   ;;  %v193_v10 = vld [vmem:[%s2497_s25 + $0x50] sm:$0xff]  }
  0x17   : > { %186 = vst [vmem:[%s2502_s26 + $0x40] sm:$0xff] %v185_v8   ;;  %v197_v11 = vld [vmem:[%s2497_s25 + $0x58] sm:$0xff]   ;;  %190 = vst [vmem:[%s2502_s26 + $0x48] sm:$0xff] %v189_v9   ;;  %v201_v12 = vld [vmem:[%s2497_s25 + $0x60] sm:$0xff]  }
  0x18   : > { %194 = vst [vmem:[%s2502_s26 + $0x50] sm:$0xff] %v193_v10   ;;  %198 = vst [vmem:[%s2502_s26 + $0x58] sm:$0xff] %v197_v11   ;;  %v205_v13 = vld [vmem:[%s2497_s25 + $0xd0] sm:$0xff]   ;;  %v209_v14 = vld [vmem:[%s2497_s25 + $0xd8] sm:$0xff]  }
  0x19   : > { %202 = vst [vmem:[%s2502_s26 + $0x60] sm:$0xff] %v201_v12   ;;  %206 = vst [vmem:[%s2502_s26 + $0x68] sm:$0xff] %v205_v13   ;;  %v213_v15 = vld [vmem:[%s2497_s25 + $0xe0] sm:$0xff]   ;;  %v217_v16 = vld [vmem:[%s2497_s25 + $0xe8] sm:$0xff]  }
  0x1a   : > { %210 = vst [vmem:[%s2502_s26 + $0x70] sm:$0xff] %v209_v14   ;;  %v221_v17 = vld [vmem:[%s2497_s25 + $0xf0] sm:$0xff]   ;;  %214 = vst [vmem:[%s2502_s26 + $0x78] sm:$0xff] %v213_v15   ;;  %v225_v18 = vld [vmem:[%s2497_s25 + $0xf8] sm:$0xff]  }
  0x1b   : > { %218 = vst [vmem:[%s2502_s26 + $0x80] sm:$0xff] %v217_v16   ;;  %222 = vst [vmem:[%s2502_s26 + $0x88] sm:$0xff] %v221_v17   ;;  %v229_v19 = vld [vmem:[%s2497_s25 + $0x100] sm:$0xff]   ;;  %v233_v20 = vld [vmem:[%s2497_s25 + $0x108] sm:$0xff]  }
  0x1c   : > { %226 = vst [vmem:[%s2502_s26 + $0x90] sm:$0xff] %v225_v18   ;;  %230 = vst [vmem:[%s2502_s26 + $0x98] sm:$0xff] %v229_v19   ;;  %v237_v21 = vld [vmem:[%s2497_s25 + $0x110] sm:$0xff]   ;;  %v241_v22 = vld [vmem:[%s2497_s25 + $0x118] sm:$0xff]  }
  0x1d   : > { %234 = vst [vmem:[%s2502_s26 + $0xa0] sm:$0xff] %v233_v20   ;;  %v245_v23 = vld [vmem:[%s2497_s25 + $0x120] sm:$0xff]   ;;  %238 = vst [vmem:[%s2502_s26 + $0xa8] sm:$0xff] %v237_v21   ;;  %v249_v24 = vld [vmem:[%s2497_s25 + $0x128] sm:$0xff]  }
  0x1e   : > { %242 = vst [vmem:[%s2502_s26 + $0xb0] sm:$0xff] %v241_v22   ;;  %246 = vst [vmem:[%s2502_s26 + $0xb8] sm:$0xff] %v245_v23   ;;  %v253_v25 = vld [vmem:[%s2497_s25 + $0x130] sm:$0xff]   ;;  %v257_v26 = vld [vmem:[%s2497_s25 + $0x1a0] sm:$0xff]  }
  0x1f   : > { %250 = vst [vmem:[%s2502_s26 + $0xc0] sm:$0xff] %v249_v24   ;;  %254 = vst [vmem:[%s2502_s26 + $0xc8] sm:$0xff] %v253_v25   ;;  %v261_v27 = vld [vmem:[%s2497_s25 + $0x1a8] sm:$0xff]   ;;  %v265_v28 = vld [vmem:[%s2497_s25 + $0x1b0] sm:$0xff]  }
  0x20   : > { %258 = vst [vmem:[%s2502_s26 + $0xd0] sm:$0xff] %v257_v26   ;;  %v269_v29 = vld [vmem:[%s2497_s25 + $0x1b8] sm:$0xff]   ;;  %262 = vst [vmem:[%s2502_s26 + $0xd8] sm:$0xff] %v261_v27   ;;  %v273_v30 = vld [vmem:[%s2497_s25 + $0x1c0] sm:$0xff]  }
  0x21   : > { %266 = vst [vmem:[%s2502_s26 + $0xe0] sm:$0xff] %v265_v28   ;;  %270 = vst [vmem:[%s2502_s26 + $0xe8] sm:$0xff] %v269_v29   ;;  %v277_v31 = vld [vmem:[%s2497_s25 + $0x1c8] sm:$0xff]   ;;  %v281_v32 = vld [vmem:[%s2497_s25 + $0x1d0] sm:$0xff]  }
  0x22   : > { %274 = vst [vmem:[%s2502_s26 + $0xf0] sm:$0xff] %v273_v30   ;;  %278 = vst [vmem:[%s2502_s26 + $0xf8] sm:$0xff] %v277_v31   ;;  %v285_v33 = vld [vmem:[%s2497_s25 + $0x1d8] sm:$0xff]   ;;  %v289_v34 = vld [vmem:[%s2497_s25 + $0x1e0] sm:$0xff]  }
  0x23   : > { %282 = vst [vmem:[%s2502_s26 + $0x100] sm:$0xff] %v281_v32   ;;  %v293_v35 = vld [vmem:[%s2497_s25 + $0x1e8] sm:$0xff]   ;;  %286 = vst [vmem:[%s2502_s26 + $0x108] sm:$0xff] %v285_v33   ;;  %v297_v36 = vld [vmem:[%s2497_s25 + $0x1f0] sm:$0xff]  }
  0x24   : > { %290 = vst [vmem:[%s2502_s26 + $0x110] sm:$0xff] %v289_v34   ;;  %294 = vst [vmem:[%s2502_s26 + $0x118] sm:$0xff] %v293_v35   ;;  %v301_v37 = vld [vmem:[%s2497_s25 + $0x1f8] sm:$0xff]   ;;  %v305_v38 = vld [vmem:[%s2497_s25 + $0x200] sm:$0xff]  }
  0x25   : > { %298 = vst [vmem:[%s2502_s26 + $0x120] sm:$0xff] %v297_v36   ;;  %302 = vst [vmem:[%s2502_s26 + $0x128] sm:$0xff] %v301_v37   ;;  %v309_v39 = vld [vmem:[%s2497_s25 + $0x270] sm:$0xff]   ;;  %v313_v40 = vld [vmem:[%s2497_s25 + $0x278] sm:$0xff]  }
  0x26   : > { %306 = vst [vmem:[%s2502_s26 + $0x130] sm:$0xff] %v305_v38   ;;  %v317_v41 = vld [vmem:[%s2497_s25 + $0x280] sm:$0xff]   ;;  %310 = vst [vmem:[%s2502_s26 + $0x138] sm:$0xff] %v309_v39   ;;  %v321_v42 = vld [vmem:[%s2497_s25 + $0x288] sm:$0xff]  }
  0x27   : > { %314 = vst [vmem:[%s2502_s26 + $0x140] sm:$0xff] %v313_v40   ;;  %318 = vst [vmem:[%s2502_s26 + $0x148] sm:$0xff] %v317_v41   ;;  %v325_v43 = vld [vmem:[%s2497_s25 + $0x290] sm:$0xff]   ;;  %v329_v44 = vld [vmem:[%s2497_s25 + $0x298] sm:$0xff]  }
  0x28   : > { %322 = vst [vmem:[%s2502_s26 + $0x150] sm:$0xff] %v321_v42   ;;  %326 = vst [vmem:[%s2502_s26 + $0x158] sm:$0xff] %v325_v43   ;;  %v333_v45 = vld [vmem:[%s2497_s25 + $0x2a0] sm:$0xff]   ;;  %v337_v46 = vld [vmem:[%s2497_s25 + $0x2a8] sm:$0xff]  }
  0x29   : > { %330 = vst [vmem:[%s2502_s26 + $0x160] sm:$0xff] %v329_v44   ;;  %v341_v47 = vld [vmem:[%s2497_s25 + $0x2b0] sm:$0xff]   ;;  %334 = vst [vmem:[%s2502_s26 + $0x168] sm:$0xff] %v333_v45   ;;  %v345_v48 = vld [vmem:[%s2497_s25 + $0x2b8] sm:$0xff]  }
  0x2a   : > { %338 = vst [vmem:[%s2502_s26 + $0x170] sm:$0xff] %v337_v46   ;;  %342 = vst [vmem:[%s2502_s26 + $0x178] sm:$0xff] %v341_v47   ;;  %v349_v49 = vld [vmem:[%s2497_s25 + $0x2c0] sm:$0xff]   ;;  %v353_v50 = vld [vmem:[%s2497_s25 + $0x2c8] sm:$0xff]  }
  0x2b   : > { %346 = vst [vmem:[%s2502_s26 + $0x180] sm:$0xff] %v345_v48   ;;  %350 = vst [vmem:[%s2502_s26 + $0x188] sm:$0xff] %v349_v49   ;;  %v357_v51 = vld [vmem:[%s2497_s25 + $0x2d0] sm:$0xff]  }
  0x2c   : > { %354 = vst [vmem:[%s2502_s26 + $0x190] sm:$0xff] %v353_v50   ;;  %358 = vst [vmem:[%s2502_s26 + $0x198] sm:$0xff] %v357_v51  }
  0x2d PF: > { %p2007_p5 = scmp.ge.s32.totalorder %s2440_s14, 1  ;;  %p590_p6 = scmp.lt.s32.totalorder %s2440_s14, 3 }
  0x2f   : > { %p591_p7 = pnand %p2007_p5, %p590_p6 }
  0x31   : > { %594 = sbr.rel (%p591_p7) target bundleno = 402 (0x192), region = 69 }
  0x38   : > { %v2364_v52 = vld [vmem:[%s3210_s1] sm:$0xff]   ;;  %vm1171_vm0 = vcmask 1043456   ;;  %v2365_v53 = vld [vmem:[%s3210_s1 + $0x8] sm:$0x1f]   ;;  %vm1172_vm1 = vcmask 1044480   ;;  %s597_s4 = sand.u32 1, %s2432_s12  }
  0x39   : > { %2225 = vmatprep.subr.bf16.mxu0 %v2364_v52  ;;  %2333 = vmatprep.subr.bf16.mxu1 %v2364_v52  ;;  %v2442_v54 = vmov 65535   ;;  %s2338_s5 = smul.u32 416, %s597_s4  ;;  %vm1014_vm2 = vcmask 203776   ;;  %vm1913_vm3 = vcmask 125952  }
  0x3a   : > { %2226 = vmatpush3.bf16.msra.mxu0 %v2364_v52  ;;  %2335 = vmatpush3.bf16.msra.mxu1 %v2364_v52  ;;  %v1173_v55 = vsel %vm1171_vm0, 4294967295, %v2442_v54  ;;  %s2850_s9 = smul.u32 26, %s2002_s15 }
  0x3b   : > { %v1174_v56 = vsel %vm1172_vm1, %v1173_v55, 0  ;;  %s2614_s6 = scalar_lea.vmem [#allocation2], %s2338_s5 }
  0x3c   : > { %v1176_v57 = vand.u32 %v2365_v53, %v1174_v56  ;;  %v2366_v58 = vld [vmem:[%s2614_s6] sm:$0xff]   ;;  %v2367_v59 = vld [vmem:[%s2614_s6 + $0xd0] sm:$0xff]   ;;  %v2368_v60 = vld [vmem:[%s2614_s6 + $0x8] sm:$0xff]   ;;  %p622_p8 = scmp.lt.s32.totalorder %s2850_s9, 51 }
  0x3d   : > { %2229 = vmatprep.mubr.msk.bf16.mxu0 %vm1014_vm2, %v2366_v58  ;;  %2281 = vmatprep.mubr.msk.bf16.mxu1 %vm1014_vm2, %v2367_v59  ;;  %v2369_v61 = vld [vmem:[%s2614_s6 + $0xd8] sm:$0xff]   ;;  %v2370_v62 = vld [vmem:[%s2614_s6 + $0x10] sm:$0xff]   ;;  %v2371_v63 = vld [vmem:[%s2614_s6 + $0xe0] sm:$0xff]  }
  0x3e   : > { %2227 = vmatprep.subr.bf16.mxu0 %v1176_v57  ;;  %2334 = vmatprep.subr.bf16.mxu1 %v1176_v57  ;;  %v2372_v0 = vld [vmem:[%s2614_s6 + $0x18] sm:$0xff]   ;;  %v2373_v1 = vld [vmem:[%s2614_s6 + $0xe8] sm:$0xff]   ;;  %v2374_v2 = vld [vmem:[%s2614_s6 + $0x20] sm:$0xff]   ;;  %s3284_s9 = smov (!%p622_p8, %s2850_s9), 51 }
  0x3f   : > { %2228 = vmatpush3.bf16.msra.mxu0 %v1176_v57  ;;  %2336 = vmatpush3.bf16.msra.mxu1 %v1176_v57  ;;  %v2375_v3 = vld [vmem:[%s2614_s6 + $0xf0] sm:$0xff]   ;;  %v2376_v4 = vld [vmem:[%s2614_s6 + $0x28] sm:$0xff]   ;;  %v2377_v5 = vld [vmem:[%s2614_s6 + $0xf8] sm:$0xff]   ;;  %s2008_s10 = sshll.u32 %s3284_s9, 2 }
  0x40   : > { %v2378_v6 = vld [vmem:[%s2614_s6 + $0x30] sm:$0xff]   ;;  %v2379_v7 = vld [vmem:[%s2614_s6 + $0x100] sm:$0xff]   ;;  %v2380_v8 = vld [vmem:[%s2614_s6 + $0x38] sm:$0xff]   ;;  %s2984_s14 = scalar_lea.vmem %s3212_s3, %s2008_s10 }
  0x41   : > { %v2381_v9 = vld [vmem:[%s2614_s6 + $0x108] sm:$0xff]   ;;  %v2382_v10 = vld [vmem:[%s2614_s6 + $0x40] sm:$0xff]   ;;  %v2383_v11 = vld [vmem:[%s2614_s6 + $0x110] sm:$0xff]  }
  0x42   : > { %2230 = vmatmul.mubr.msk.bf16.vlgmr.msra.gmra.mrb[0].mxu0 %vm1014_vm2, %v2368_v60  ;;  %2282 = vmatmul.mubr.msk.bf16.vlgmr.msra.gmra.mrb[0].mxu1 %vm1014_vm2, %v2369_v61  ;;  %v2384_v12 = vld [vmem:[%s2614_s6 + $0x48] sm:$0xff]   ;;  %v2385_v13 = vld [vmem:[%s2614_s6 + $0x118] sm:$0xff]   ;;  %v2386_v14 = vld [vmem:[%s2614_s6 + $0x50] sm:$0xff]  }
  0x43   : > { %2233 = vmatprep.mubr.msk.bf16.mxu0 %vm1014_vm2, %v2370_v62  ;;  %2285 = vmatprep.mubr.msk.bf16.mxu1 %vm1014_vm2, %v2371_v63  ;;  %v2387_v15 = vld [vmem:[%s2614_s6 + $0x120] sm:$0xff]   ;;  %v2388_v16 = vld [vmem:[%s2614_s6 + $0x58] sm:$0xff]   ;;  %v2389_v17 = vld [vmem:[%s2614_s6 + $0x128] sm:$0xff]  }
  0x44   : > { %v2390_v18 = vld [vmem:[%s2614_s6 + $0x60] sm:$0xff]   ;;  %v2391_v19 = vld [vmem:[%s2614_s6 + $0x130] sm:$0xff]   ;;  %v2392_v20 = vld [vmem:[%s2614_s6 + $0x68] sm:$0xff]  }
  0x45   : > { %v2393_v21 = vld [vmem:[%s2614_s6 + $0x138] sm:$0xff]   ;;  %v2394_v22 = vld [vmem:[%s2614_s6 + $0x70] sm:$0xff]   ;;  %v2395_v23 = vld [vmem:[%s2614_s6 + $0x140] sm:$0xff]  }
  0x46   : > { %v2396_v24 = vld [vmem:[%s2614_s6 + $0x78] sm:$0xff]   ;;  %v2397_v25 = vld [vmem:[%s2614_s6 + $0x148] sm:$0xff]   ;;  %v2398_v26 = vld [vmem:[%s2614_s6 + $0x80] sm:$0xff]  }
  0x47   : > { %v2399_v27 = vld [vmem:[%s2614_s6 + $0x150] sm:$0xff]   ;;  %v2400_v28 = vld [vmem:[%s2614_s6 + $0x88] sm:$0xff]   ;;  %v2401_v29 = vld [vmem:[%s2614_s6 + $0x158] sm:$0xff]  }
  0x48   : > { %v2402_v30 = vld [vmem:[%s2614_s6 + $0x90] sm:$0xff]   ;;  %v2403_v31 = vld [vmem:[%s2614_s6 + $0x160] sm:$0xff]   ;;  %v2404_v32 = vld [vmem:[%s2614_s6 + $0x98] sm:$0xff]  }
  0x49   : > { %v2405_v33 = vld [vmem:[%s2614_s6 + $0x168] sm:$0xff]   ;;  %v2406_v34 = vld [vmem:[%s2614_s6 + $0xa0] sm:$0xff]   ;;  %v2407_v35 = vld [vmem:[%s2614_s6 + $0x170] sm:$0xff]  }
  0x4a   : > { %2234 = vmatmul.mubr.msk.bf16.gmra.mrb[4].mxu0 %vm1014_vm2, %v2372_v0  ;;  %2286 = vmatmul.mubr.msk.bf16.gmra.mrb[4].mxu1 %vm1014_vm2, %v2373_v1  ;;  %v2408_v36 = vld [vmem:[%s2614_s6 + $0xa8] sm:$0xff]   ;;  %v2409_v37 = vld [vmem:[%s2614_s6 + $0x178] sm:$0xff]   ;;  %v2410_v38 = vld [vmem:[%s2614_s6 + $0xb0] sm:$0xff]  }
  0x4b   : > { %2237 = vmatprep.mubr.msk.bf16.mxu0 %vm1014_vm2, %v2374_v2  ;;  %2289 = vmatprep.mubr.msk.bf16.mxu1 %vm1014_vm2, %v2375_v3  ;;  %v2411_v39 = vld [vmem:[%s2614_s6 + $0x180] sm:$0xff]   ;;  %v2412_v40 = vld [vmem:[%s2614_s6 + $0xb8] sm:$0xff]   ;;  %v2413_v41 = vld [vmem:[%s2614_s6 + $0x188] sm:$0xff]  }
  0x4c   : > { %v2414_v42 = vld [vmem:[%s2614_s6 + $0xc0] sm:$0xff]   ;;  %v2415_v43 = vld [vmem:[%s2614_s6 + $0x190] sm:$0xff]   ;;  %v2416_v44 = vld [vmem:[%s2614_s6 + $0xc8] sm:$0xff]  }
  0x4d   : > { %v2417_v45 = vld [vmem:[%s2614_s6 + $0x198] sm:$0xff]  }
  0x52   : > { %2238 = vmatmul.mubr.msk.bf16.gmra.mrb[8].mxu0 %vm1014_vm2, %v2376_v4  ;;  %2290 = vmatmul.mubr.msk.bf16.gmra.mrb[8].mxu1 %vm1014_vm2, %v2377_v5 }
  0x53   : > { %2241 = vmatprep.mubr.msk.bf16.mxu0 %vm1014_vm2, %v2378_v6  ;;  %2293 = vmatprep.mubr.msk.bf16.mxu1 %vm1014_vm2, %v2379_v7 }
  0x5a   : > { %2242 = vmatmul.mubr.msk.bf16.gmra.mrb[12].mxu0 %vm1014_vm2, %v2380_v8  ;;  %2294 = vmatmul.mubr.msk.bf16.gmra.mrb[12].mxu1 %vm1014_vm2, %v2381_v9  ;;  %v2729_v8 = vld [vmem:[%s3211_s2] ss:$0 sm:$0xff] }
  0x5b   : > { %2245 = vmatprep.mubr.msk.bf16.mxu0 %vm1014_vm2, %v2382_v10  ;;  %2297 = vmatprep.mubr.msk.bf16.mxu1 %vm1014_vm2, %v2383_v11 }
  0x62   : > { %2246 = vmatmul.mubr.msk.bf16.gmra.mrb[16].mxu0 %vm1014_vm2, %v2384_v12  ;;  %2298 = vmatmul.mubr.msk.bf16.gmra.mrb[16].mxu1 %vm1014_vm2, %v2385_v13 }
  0x63   : > { %2249 = vmatprep.mubr.msk.bf16.mxu0 %vm1014_vm2, %v2386_v14  ;;  %2301 = vmatprep.mubr.msk.bf16.mxu1 %vm1014_vm2, %v2387_v15 }
  0x6a   : > { %2250 = vmatmul.mubr.msk.bf16.gmra.mrb[20].mxu0 %vm1014_vm2, %v2388_v16  ;;  %2302 = vmatmul.mubr.msk.bf16.gmra.mrb[20].mxu1 %vm1014_vm2, %v2389_v17 }
  0x6b   : > { %2253 = vmatprep.mubr.msk.bf16.mxu0 %vm1014_vm2, %v2390_v18  ;;  %2305 = vmatprep.mubr.msk.bf16.mxu1 %vm1014_vm2, %v2391_v19 }
  0x72   : > { %2254 = vmatmul.mubr.msk.bf16.gmra.mrb[24].mxu0 %vm1014_vm2, %v2392_v20  ;;  %2306 = vmatmul.mubr.msk.bf16.gmra.mrb[24].mxu1 %vm1014_vm2, %v2393_v21 }
  0x73   : > { %2257 = vmatprep.mubr.msk.bf16.mxu0 %vm1014_vm2, %v2394_v22  ;;  %2309 = vmatprep.mubr.msk.bf16.mxu1 %vm1014_vm2, %v2395_v23 }
  0x7a   : > { %2258 = vmatmul.mubr.msk.bf16.gmra.mrb[28].mxu0 %vm1014_vm2, %v2396_v24  ;;  %2310 = vmatmul.mubr.msk.bf16.gmra.mrb[28].mxu1 %vm1014_vm2, %v2397_v25 }
  0x7b   : > { %2261 = vmatprep.mubr.msk.bf16.mxu0 %vm1014_vm2, %v2398_v26  ;;  %2313 = vmatprep.mubr.msk.bf16.mxu1 %vm1014_vm2, %v2399_v27 }
  0x82   : > { %2262 = vmatmul.mubr.msk.bf16.gmra.mrb[32].mxu0 %vm1014_vm2, %v2400_v28  ;;  %2314 = vmatmul.mubr.msk.bf16.gmra.mrb[32].mxu1 %vm1014_vm2, %v2401_v29 }
  0x83   : > { %2265 = vmatprep.mubr.msk.bf16.mxu0 %vm1014_vm2, %v2402_v30  ;;  %2317 = vmatprep.mubr.msk.bf16.mxu1 %vm1014_vm2, %v2403_v31 }
  0x8a   : > { %2266 = vmatmul.mubr.msk.bf16.gmra.mrb[36].mxu0 %vm1014_vm2, %v2404_v32  ;;  %2318 = vmatmul.mubr.msk.bf16.gmra.mrb[36].mxu1 %vm1014_vm2, %v2405_v33 }
  0x8b   : > { %2269 = vmatprep.mubr.msk.bf16.mxu0 %vm1014_vm2, %v2406_v34  ;;  %2321 = vmatprep.mubr.msk.bf16.mxu1 %vm1014_vm2, %v2407_v35 }
  0x92   : > { %2270 = vmatmul.mubr.msk.bf16.gmra.mrb[40].mxu0 %vm1014_vm2, %v2408_v36  ;;  %2322 = vmatmul.mubr.msk.bf16.gmra.mrb[40].mxu1 %vm1014_vm2, %v2409_v37 }
  0x93   : > { %2273 = vmatprep.mubr.msk.bf16.mxu0 %vm1014_vm2, %v2410_v38  ;;  %2325 = vmatprep.mubr.msk.bf16.mxu1 %vm1014_vm2, %v2411_v39 }
  0x9a   : > { %2274 = vmatmul.mubr.msk.bf16.gmra.mrb[44].mxu0 %vm1014_vm2, %v2412_v40  ;;  %2326 = vmatmul.mubr.msk.bf16.gmra.mrb[44].mxu1 %vm1014_vm2, %v2413_v41 }
  0x9b   : > { %2277 = vmatprep.mubr.msk.bf16.mxu0 %vm1014_vm2, %v2414_v42  ;;  %2329 = vmatprep.mubr.msk.bf16.mxu1 %vm1014_vm2, %v2415_v43 }
  0xa2   : > { %2278 = vmatmul.mubr.msk.bf16.gmra.mrb[48].mxu0 %vm1014_vm2, %v2416_v44  ;;  %2330 = vmatmul.mubr.msk.bf16.gmra.mrb[48].mxu1 %vm1014_vm2, %v2417_v45 }
 0x115   : > { %v2231_v46 = vpop.f32.mrb[0].mxu0  ;;  %v2283_v47 = vpop.f32.mrb[0].mxu1 }
 0x116   : > { %v1212_v48 = vpop.f32.mrb[1].mxu0  ;;  %v1420_v49 = vpop.f32.mrb[1].mxu1  ;;  %v2744_v15 = vadd.f32 %v2231_v46, %v2729_v8  ;;  %v2747_v16 = vadd.f32 %v2283_v47, %v2729_v8 }
 0x117   : > { %v2232_v50 = vpop.f32.mrb[2].mxu0  ;;  %v2284_v51 = vpop.f32.mrb[2].mxu1  ;;  %v2750_v17 = vadd.f32 %v2729_v8, %v1212_v48  ;;  %v2753_v18 = vadd.f32 %v2729_v8, %v1420_v49 }
 0x118   : > { %v1215_v52 = vpop.f32.mrb[3].mxu0  ;;  %v1423_v53 = vpop.f32.mrb[3].mxu1  ;;  %v2756_v19 = vadd.f32 %v2232_v50, %v2729_v8  ;;  %v2759_v20 = vadd.f32 %v2284_v51, %v2729_v8 }
 0x119   : > { %v2765_v24 = vadd.f32 %v2729_v8, %v1215_v52  ;;  %v2769_v28 = vadd.f32 %v2729_v8, %v1423_v53 }
 0x11d   : > { %v2235_v54 = vpop.f32.mrb[4].mxu0  ;;  %v2287_v55 = vpop.f32.mrb[4].mxu1 }
 0x11e   : > { %v1228_v56 = vpop.f32.mrb[5].mxu0  ;;  %v1436_v57 = vpop.f32.mrb[5].mxu1  ;;  %v2772_v29 = vadd.f32 %v2235_v54, %v2729_v8  ;;  %v2775_v30 = vadd.f32 %v2287_v55, %v2729_v8 }
 0x11f   : > { %v2236_v58 = vpop.f32.mrb[6].mxu0  ;;  %v2288_v59 = vpop.f32.mrb[6].mxu1  ;;  %v2780_v35 = vadd.f32 %v2729_v8, %v1228_v56  ;;  %v2783_v36 = vadd.f32 %v2729_v8, %v1436_v57 }
 0x120   : > { %v1231_v60 = vpop.f32.mrb[7].mxu0  ;;  %v1439_v61 = vpop.f32.mrb[7].mxu1  ;;  %v2786_v39 = vadd.f32 %v2236_v58, %v2729_v8  ;;  %v2789_v40 = vadd.f32 %v2288_v59, %v2729_v8 }
 0x121   : > { %v2792_v41 = vadd.f32 %v2729_v8, %v1231_v60  ;;  %v2795_v42 = vadd.f32 %v2729_v8, %v1439_v61 }
 0x125   : > { %v2239_v62 = vpop.f32.mrb[8].mxu0  ;;  %v2291_v63 = vpop.f32.mrb[8].mxu1 }
 0x126   : > { %v1244_v0 = vpop.f32.mrb[9].mxu0  ;;  %v1452_v1 = vpop.f32.mrb[9].mxu1  ;;  %v2803_v46 = vadd.f32 %v2239_v62, %v2729_v8  ;;  %v2806_v47 = vadd.f32 %v2291_v63, %v2729_v8 }
 0x127   : > { %v2240_v2 = vpop.f32.mrb[10].mxu0  ;;  %v2292_v3 = vpop.f32.mrb[10].mxu1  ;;  %v2809_v48 = vadd.f32 %v2729_v8, %v1244_v0  ;;  %v2815_v52 = vadd.f32 %v2729_v8, %v1452_v1 }
 0x128   : > { %v1247_v4 = vpop.f32.mrb[11].mxu0  ;;  %v2720_v5 = vpop.f32.mrb[11].mxu1  ;;  %v2820_v55 = vadd.f32 %v2240_v2, %v2729_v8  ;;  %v2823_v56 = vadd.f32 %v2292_v3, %v2729_v8 }
 0x129   : > { %v2833_v0 = vadd.f32 %v2729_v8, %v1247_v4  ;;  %v2838_v58 = vadd.f32 %v2729_v8, %v2720_v5 }
 0x12d   : > { %v2722_v6 = vpop.f32.mrb[12].mxu0  ;;  %v2724_v7 = vpop.f32.mrb[12].mxu1 }
 0x12e   : > { %v2731_v9 = vpop.f32.mrb[13].mxu0  ;;  %v2733_v10 = vpop.f32.mrb[13].mxu1  ;;  %v2842_v57 = vadd.f32 %v2722_v6, %v2729_v8  ;;  %v2846_v62 = vadd.f32 %v2724_v7, %v2729_v8 }
 0x12f   : > { %v2735_v11 = vpop.f32.mrb[14].mxu0  ;;  %v2737_v12 = vpop.f32.mrb[14].mxu1  ;;  %v2856_v5 = vadd.f32 %v2729_v8, %v2731_v9  ;;  %v2860_v6 = vadd.f32 %v2729_v8, %v2733_v10 }
 0x130   : > { %v2739_v13 = vpop.f32.mrb[15].mxu0  ;;  %v2741_v14 = vpop.f32.mrb[15].mxu1  ;;  %v2866_v63 = vadd.f32 %v2735_v11, %v2729_v8  ;;  %v2870_v4 = vadd.f32 %v2737_v12, %v2729_v8 }
 0x131   : > { %v2874_v9 = vadd.f32 %v2729_v8, %v2739_v13  ;;  %v2878_v10 = vadd.f32 %v2729_v8, %v2741_v14 }
 0x135   : > { %v2247_v25 = vpop.f32.mrb[16].mxu0  ;;  %v2299_v26 = vpop.f32.mrb[16].mxu1 }
 0x136   : > { %v1276_v31 = vpop.f32.mrb[17].mxu0  ;;  %v1484_v32 = vpop.f32.mrb[17].mxu1  ;;  %v2882_v60 = vadd.f32 %v2247_v25, %v2729_v8  ;;  %v2885_v11 = vadd.f32 %v2299_v26, %v2729_v8 }
 0x137   : > { %v2248_v37 = vpop.f32.mrb[18].mxu0  ;;  %v2300_v38 = vpop.f32.mrb[18].mxu1  ;;  %v2888_v12 = vadd.f32 %v2729_v8, %v1276_v31  ;;  %v2894_v22 = vadd.f32 %v2729_v8, %v1484_v32 }
 0x138   : > { %v2797_v43 = vpop.f32.mrb[19].mxu0  ;;  %v2799_v44 = vpop.f32.mrb[19].mxu1  ;;  %3219 = vst [vmem:[#allocation3_spill] sm:$0xff] %v2882_v60  ;;  %3220 = vst [vmem:[#allocation4_spill] sm:$0xff] %v2885_v11  ;;  %v2900_v26 = vadd.f32 %v2248_v37, %v2729_v8  ;;  %v2903_v31 = vadd.f32 %v2300_v38, %v2729_v8 }
 0x139   : > { %v2914_v21 = vadd.f32 %v2729_v8, %v2797_v43  ;;  %v2919_v14 = vadd.f32 %v2729_v8, %v2799_v44 }
 0x13a   : > { %3221 = vst [vmem:[#allocation5_spill] sm:$0xff] %v2900_v26  ;;  %3222 = vst [vmem:[#allocation6_spill] sm:$0xff] %v2903_v31 }
 0x13d   : > { %v2251_v1 = vpop.f32.mrb[20].mxu0  ;;  %v2303_v2 = vpop.f32.mrb[20].mxu1 }
 0x13e   : > { %v1292_v61 = vpop.f32.mrb[21].mxu0  ;;  %v1500_v51 = vpop.f32.mrb[21].mxu1  ;;  %v2935_v59 = vadd.f32 %v2251_v1, %v2729_v8  ;;  %v2938_v44 = vadd.f32 %v2303_v2, %v2729_v8 }
 0x13f   : > { %v2252_v3 = vpop.f32.mrb[22].mxu0  ;;  %v2862_v7 = vpop.f32.mrb[22].mxu1  ;;  %v2948_v1 = vadd.f32 %v2729_v8, %v1292_v61  ;;  %v2951_v2 = vadd.f32 %v2729_v8, %v1500_v51 }
 0x140   : > { %v1295_v50 = vpop.f32.mrb[23].mxu0  ;;  %v1503_v34 = vpop.f32.mrb[23].mxu1  ;;  %3223 = vst [vmem:[#allocation7_spill] sm:$0xff] %v2938_v44  ;;  %v2954_v31 = vadd.f32 %v2252_v3, %v2729_v8 }
 0x141   : > { %v2964_v60 = vadd.f32 %v2729_v8, %v1295_v50  ;;  %v2967_v51 = vadd.f32 %v2729_v8, %v1503_v34  ;;  %v2979_v50 = vadd.f32 %v2862_v7, %v2729_v8 }
 0x142   : > { %3224 = vst [vmem:[#allocation8_spill] sm:$0xff] %v2954_v31 }
 0x143   : > { %3229 = vst [vmem:[#allocation9_spill] sm:$0xff] %v2979_v50 }
 0x145   : > { %v2255_v38 = vpop.f32.mrb[24].mxu0  ;;  %v2307_v54 = vpop.f32.mrb[24].mxu1 }
 0x146   : > { %v1317_v13 = vadd.f32 %v2255_v38, %v2729_v8  ;;  %v1525_v25 = vadd.f32 %v2307_v54, %v2729_v8  ;;  %v2928_v33 = vpop.f32.mrb[25].mxu0  ;;  %v2930_v43 = vpop.f32.mrb[25].mxu1 }
 0x147   : > { %v2256_v38 = vpop.f32.mrb[26].mxu0  ;;  %v2308_v53 = vpop.f32.mrb[26].mxu1 }
 0x148   : > { %v1653_v49 = vmax.f32 %v1317_v13, 0.0  ;;  %v1705_v45 = vmax.f32 %v1525_v25, 0.0  ;;  %v1320_v54 = vadd.f32 %v2256_v38, %v2729_v8  ;;  %v1528_v27 = vadd.f32 %v2308_v53, %v2729_v8  ;;  %v2942_v23 = vpop.f32.mrb[27].mxu0  ;;  %v2944_v37 = vpop.f32.mrb[27].mxu1 }
 0x149   : > { %v3225_v13 = vmax.f32 %v2750_v17, 0.0  ;;  %v3226_v53 = vmax.f32 %v2753_v18, 0.0  ;;  %v3228_v18 = vmax.f32 %v2769_v28, 0.0 }
 0x14a   : > { %v1654_v26 = vmax.f32 %v1320_v54, 0.0  ;;  %v1706_v11 = vmax.f32 %v1528_v27, 0.0 }
 0x14b   : > { %v1731_v25 = vmax.f32 %v3225_v13, %v1653_v49  ;;  %v1757_v38 = vmax.f32 %v3226_v53, %v1705_v45  ;;  %v3227_v49 = vmax.f32 %v2765_v24, 0.0 }
 0x14c   : > { %v1758_v45 = vmax.f32 %v3228_v18, %v1706_v11 }
 0x14d   : > { %v1783_v17 = vmax.f32 %v1731_v25, %v1757_v38  ;;  %v1732_v13 = vmax.f32 %v3227_v49, %v1654_v26  ;;  %v2259_v24 = vpop.f32.mrb[28].mxu0  ;;  %v2311_v34 = vpop.f32.mrb[28].mxu1 }
 0x14e   : > { %v1333_v26 = vadd.f32 %v2259_v24, %v2729_v8  ;;  %v1541_v25 = vadd.f32 %v2311_v34, %v2729_v8  ;;  %v1324_v38 = vpop.f32.mrb[29].mxu0  ;;  %v1532_v49 = vpop.f32.mrb[29].mxu1 }
 0x14f   : > { %v2145_v28 = vpack.c.bf16 %v1783_v17, %v1783_v17  ;;  %v1784_v11 = vmax.f32 %v1732_v13, %v1758_v45  ;;  %v1325_v53 = vadd.f32 %v2729_v8, %v1324_v38  ;;  %v1533_v3 = vadd.f32 %v2729_v8, %v1532_v49  ;;  %v2260_v61 = vpop.f32.mrb[30].mxu0  ;;  %v2312_v54 = vpop.f32.mrb[30].mxu1 }
 0x150   : > { %v1657_v13 = vmax.f32 %v1333_v26, 0.0  ;;  %v1709_v45 = vmax.f32 %v1541_v25, 0.0  ;;  %v1336_v24 = vadd.f32 %v2260_v61, %v2729_v8  ;;  %v1327_v34 = vpop.f32.mrb[31].mxu0  ;;  %v1535_v27 = vpop.f32.mrb[31].mxu1  ;;  %v1544_v7 = vadd.f32 %v2312_v54, %v2729_v8 }
 0x151   : > { %1914 = vst.msk [vmem:[%s2984_s14] sm:$0xf] %vm1913_vm3, %v2145_v28  ;;  %v2146_v17 = vpack.c.bf16 %v1784_v11, %v1784_v11  ;;  %v1655_v32 = vmax.f32 %v1325_v53, 0.0  ;;  %v1707_v18 = vmax.f32 %v1533_v3, 0.0  ;;  %v1328_v31 = vadd.f32 %v2729_v8, %v1327_v34 }
 0x152   : > { %v3230_v38 = vmax.f32 %v2780_v35, 0.0  ;;  %v3231_v28 = vmax.f32 %v2783_v36, 0.0  ;;  %v1658_v26 = vmax.f32 %v1336_v24, 0.0  ;;  %v1536_v25 = vadd.f32 %v2729_v8, %v1535_v27 }
 0x153   : > { %1915 = vst.msk [vmem:[%s2984_s14 + $0x4] sm:$0xf] %vm1913_vm3, %v2146_v17  ;;  %v3232_v61 = vmax.f32 %v2744_v15, 0.0  ;;  %v3233_v3 = vmax.f32 %v2747_v16, 0.0  ;;  %v1710_v54 = vmax.f32 %v1544_v7, 0.0  ;;  %v1656_v44 = vmax.f32 %v1328_v31, 0.0 }
 0x154   : > { %v1735_v49 = vmax.f32 %v3230_v38, %v1657_v13  ;;  %v1761_v11 = vmax.f32 %v3231_v28, %v1709_v45  ;;  %v3010_v17 = vadd.f32 %v2729_v8, %v2928_v33  ;;  %v3234_v13 = vmax.f32 %v2792_v41, 0.0 }
 0x155   : > { %v1733_v50 = vmax.f32 %v3232_v61, %v1655_v32  ;;  %v1759_v53 = vmax.f32 %v3233_v3, %v1707_v18  ;;  %v1708_v45 = vmax.f32 %v1536_v25, 0.0  ;;  %v3016_v27 = vadd.f32 %v2729_v8, %v2930_v43  ;;  %v2263_v7 = vpop.f32.mrb[32].mxu0  ;;  %v2315_v33 = vpop.f32.mrb[32].mxu1 }
 0x156   : > { %v1787_v35 = vmax.f32 %v1735_v49, %v1761_v11  ;;  %v1736_v36 = vmax.f32 %v3234_v13, %v1658_v26  ;;  %v3235_v32 = vmax.f32 %v2795_v42, 0.0  ;;  %v3236_v18 = vmax.f32 %v2756_v19, 0.0  ;;  %v1340_v43 = vpop.f32.mrb[33].mxu0 }
 0x157   : > { %v1785_v15 = vmax.f32 %v1733_v50, %v1759_v53  ;;  %v3237_v34 = vmax.f32 %v2759_v20, 0.0  ;;  %v1349_v38 = vadd.f32 %v2263_v7, %v2729_v8  ;;  %v1557_v49 = vadd.f32 %v2315_v33, %v2729_v8  ;;  %v1548_v50 = vpop.f32.mrb[33].mxu1 }
 0x158   : > { %v1762_v16 = vmax.f32 %v3235_v32, %v1710_v54  ;;  %v1734_v31 = vmax.f32 %v3236_v18, %v1656_v44  ;;  %v2149_v24 = vpack.c.bf16 %v1787_v35, %v1787_v35  ;;  %v1341_v11 = vadd.f32 %v2729_v8, %v1340_v43  ;;  %v2264_v44 = vpop.f32.mrb[34].mxu0  ;;  %v2316_v26 = vpop.f32.mrb[34].mxu1 }
 0x159   : > { %v1760_v41 = vmax.f32 %v3237_v34, %v1708_v45  ;;  %v2147_v28 = vpack.c.bf16 %v1785_v15, %v1785_v15  ;;  %v1549_v19 = vadd.f32 %v2729_v8, %v1548_v50  ;;  %v1661_v25 = vmax.f32 %v1349_v38, 0.0  ;;  %v1343_v53 = vpop.f32.mrb[35].mxu0  ;;  %v1551_v54 = vpop.f32.mrb[35].mxu1 }
 0x15a   : > { %v1788_v42 = vmax.f32 %v1736_v36, %v1762_v16  ;;  %1918 = vst.msk [vmem:[%s2984_s14 + $0x10] sm:$0xf] %vm1913_vm3, %v2149_v24  ;;  %v1713_v61 = vmax.f32 %v1557_v49, 0.0  ;;  %v1352_v3 = vadd.f32 %v2264_v44, %v2729_v8  ;;  %v1659_v13 = vmax.f32 %v1341_v11, 0.0 }
 0x15b   : > { %v1786_v20 = vmax.f32 %v1734_v31, %v1760_v41  ;;  %1916 = vst.msk [vmem:[%s2984_s14 + $0x8] sm:$0xf] %vm1913_vm3, %v2147_v28  ;;  %v1711_v36 = vmax.f32 %v1549_v19, 0.0  ;;  %v1560_v45 = vadd.f32 %v2316_v26, %v2729_v8  ;;  %v3238_v32 = vmax.f32 %v2809_v48, 0.0 }
 0x15c   : > { %v2150_v35 = vpack.c.bf16 %v1788_v42, %v1788_v42  ;;  %v3239_v18 = vmax.f32 %v2815_v52, 0.0  ;;  %v1662_v7 = vmax.f32 %v1352_v3, 0.0  ;;  %v3240_v33 = vmax.f32 %v2772_v29, 0.0 }
 0x15d   : > { %v2148_v15 = vpack.c.bf16 %v1786_v20, %v1786_v20  ;;  %v1739_v16 = vmax.f32 %v3238_v32, %v1661_v25  ;;  %v3241_v34 = vmax.f32 %v2775_v30, 0.0  ;;  %v1714_v38 = vmax.f32 %v1560_v45, 0.0  ;;  %v2267_v44 = vpop.f32.mrb[36].mxu0  ;;  %v2319_v26 = vpop.f32.mrb[36].mxu1 }
 0x15e   : > { %v1765_v31 = vmax.f32 %v3239_v18, %v1713_v61  ;;  %1919 = vst.msk [vmem:[%s2984_s14 + $0x14] sm:$0xf] %vm1913_vm3, %v2150_v35  ;;  %v1737_v24 = vmax.f32 %v3240_v33, %v1659_v13  ;;  %v1344_v49 = vadd.f32 %v2729_v8, %v1343_v53  ;;  %v1651_v43 = vmax.f32 %v3010_v17, 0.0  ;;  %v1564_v53 = vpop.f32.mrb[37].mxu1 }
 0x15f   : > { %v1763_v41 = vmax.f32 %v3241_v34, %v1711_v36  ;;  %1917 = vst.msk [vmem:[%s2984_s14 + $0xc] sm:$0xf] %vm1913_vm3, %v2148_v15  ;;  %v3242_v52 = vmax.f32 %v2833_v0, 0.0  ;;  %v1552_v28 = vadd.f32 %v2729_v8, %v1551_v54  ;;  %v1703_v42 = vmax.f32 %v3016_v27, 0.0  ;;  %v1356_v0 = vpop.f32.mrb[37].mxu0  ;;  %v2320_v15 = vpop.f32.mrb[38].mxu1 }
 0x160   : > { %v1791_v48 = vmax.f32 %v1739_v16, %v1765_v31  ;;  %v3243_v11 = vmax.f32 %v2838_v58, 0.0  ;;  %v1660_v19 = vmax.f32 %v1344_v49, 0.0  ;;  %v1365_v61 = vadd.f32 %v2267_v44, %v2729_v8  ;;  %v2268_v45 = vpop.f32.mrb[38].mxu0  ;;  %v3275_v27 = vld [vmem:[#allocation7_spill] sm:$0xff] }
 0x161   : > { %v1740_v50 = vmax.f32 %v3242_v52, %v1662_v7  ;;  %v1789_v29 = vmax.f32 %v1737_v24, %v1763_v41  ;;  %v1712_v25 = vmax.f32 %v1552_v28, 0.0  ;;  %v1573_v3 = vadd.f32 %v2319_v26, %v2729_v8  ;;  %v1359_v33 = vpop.f32.mrb[39].mxu0  ;;  %v1567_v24 = vpop.f32.mrb[39].mxu1 }
 0x162   : > { %v1766_v30 = vmax.f32 %v3243_v11, %v1714_v38  ;;  %v2153_v20 = vpack.c.bf16 %v1791_v48, %v1791_v48  ;;  %v3244_v13 = vmax.f32 %v2786_v39, 0.0  ;;  %v1357_v58 = vadd.f32 %v2729_v8, %v1356_v0 }
 0x163   : > { %v2151_v54 = vpack.c.bf16 %v1789_v29, %v1789_v29  ;;  %v3245_v32 = vmax.f32 %v2789_v40, 0.0  ;;  %v1665_v18 = vmax.f32 %v1365_v61, 0.0  ;;  %v1717_v31 = vmax.f32 %v1573_v3, 0.0 }
 0x164   : > { %v1792_v35 = vmax.f32 %v1740_v50, %v1766_v30  ;;  %v1738_v36 = vmax.f32 %v3244_v13, %v1660_v19  ;;  %1922 = vst.msk [vmem:[%s2984_s14 + $0x20] sm:$0xf] %vm1913_vm3, %v2153_v20  ;;  %v1565_v7 = vadd.f32 %v2729_v8, %v1564_v53  ;;  %v1663_v34 = vmax.f32 %v1357_v58, 0.0 }
 0x165   : > { %v1764_v16 = vmax.f32 %v3245_v32, %v1712_v25  ;;  %1920 = vst.msk [vmem:[%s2984_s14 + $0x18] sm:$0xf] %vm1913_vm3, %v2151_v54  ;;  %v1368_v41 = vadd.f32 %v2268_v45, %v2729_v8  ;;  %v1576_v38 = vadd.f32 %v2320_v15, %v2729_v8  ;;  %v3246_v48 = vmax.f32 %v2856_v5, 0.0  ;;  %v2323_v13 = vpop.f32.mrb[40].mxu1 }
 0x166   : > { %v2154_v39 = vpack.c.bf16 %v1792_v35, %v1792_v35  ;;  %v3247_v52 = vmax.f32 %v2860_v6, 0.0  ;;  %v1715_v28 = vmax.f32 %v1565_v7, 0.0  ;;  %v3248_v29 = vmax.f32 %v2803_v46, 0.0  ;;  %v2271_v35 = vpop.f32.mrb[40].mxu0 }
 0x167   : > { %v1790_v49 = vmax.f32 %v1738_v36, %v1764_v16  ;;  %v1743_v40 = vmax.f32 %v3246_v48, %v1665_v18  ;;  %v1666_v30 = vmax.f32 %v1368_v41, 0.0  ;;  %v1718_v19 = vmax.f32 %v1576_v38, 0.0  ;;  %v1372_v15 = vpop.f32.mrb[41].mxu0 }
 0x168   : > { %v1769_v50 = vmax.f32 %v3247_v52, %v1717_v31  ;;  %1923 = vst.msk [vmem:[%s2984_s14 + $0x24] sm:$0xf] %vm1913_vm3, %v2154_v39  ;;  %v1741_v11 = vmax.f32 %v3248_v29, %v1663_v34  ;;  %v1360_v44 = vadd.f32 %v2729_v8, %v1359_v33  ;;  %v3249_v25 = vmax.f32 %v2806_v47, 0.0  ;;  %v2272_v31 = vpop.f32.mrb[42].mxu0 }
 0x169   : > { %v2152_v26 = vpack.c.bf16 %v1790_v49, %v1790_v49  ;;  %v1568_v61 = vadd.f32 %v2729_v8, %v1567_v24  ;;  %v3082_v6 = vadd.f32 %v2729_v8, %v2942_v23  ;;  %v3250_v3 = vmax.f32 %v2874_v9, 0.0  ;;  %v1580_v23 = vpop.f32.mrb[41].mxu1  ;;  %v1375_v38 = vpop.f32.mrb[43].mxu0 }
 0x16a   : > { %v1795_v20 = vmax.f32 %v1743_v40, %v1769_v50  ;;  %v1767_v5 = vmax.f32 %v3249_v25, %v1715_v28  ;;  %v3251_v46 = vmax.f32 %v2878_v10, 0.0  ;;  %v1664_v54 = vmax.f32 %v1360_v44, 0.0  ;;  %v2324_v7 = vpop.f32.mrb[42].mxu1 }
 0x16b   : > { %v1744_v0 = vmax.f32 %v3250_v3, %v1666_v30  ;;  %1921 = vst.msk [vmem:[%s2984_s14 + $0x1c] sm:$0xf] %vm1913_vm3, %v2152_v26  ;;  %v1716_v58 = vmax.f32 %v1568_v61, 0.0  ;;  %v1381_v45 = vadd.f32 %v2271_v35, %v2729_v8  ;;  %v3252_v9 = vmax.f32 %v2820_v55, 0.0  ;;  %v1583_v55 = vpop.f32.mrb[43].mxu1 }
 0x16c   : > { %v1770_v53 = vmax.f32 %v3251_v46, %v1718_v19  ;;  %v2157_v47 = vpack.c.bf16 %v1795_v20, %v1795_v20  ;;  %v1793_v36 = vmax.f32 %v1741_v11, %v1767_v5  ;;  %v1589_v10 = vadd.f32 %v2323_v13, %v2729_v8 }
 0x16d   : > { %v1742_v16 = vmax.f32 %v3252_v9, %v1664_v54  ;;  %v1373_v18 = vadd.f32 %v2729_v8, %v1372_v15  ;;  %v3253_v24 = vmax.f32 %v2823_v56, 0.0  ;;  %v1669_v34 = vmax.f32 %v1381_v45, 0.0  ;;  %v2275_v35 = vpop.f32.mrb[44].mxu0  ;;  %v2327_v13 = vpop.f32.mrb[44].mxu1 }
 0x16e   : > { %v1796_v32 = vmax.f32 %v1744_v0, %v1770_v53  ;;  %1926 = vst.msk [vmem:[%s2984_s14 + $0x30] sm:$0xf] %vm1913_vm3, %v2157_v47  ;;  %v2155_v33 = vpack.c.bf16 %v1793_v36, %v1793_v36  ;;  %v1581_v41 = vadd.f32 %v2729_v8, %v1580_v23  ;;  %v1721_v48 = vmax.f32 %v1589_v10, 0.0  ;;  %v1388_v15 = vpop.f32.mrb[45].mxu0 }
 0x16f   : > { %v1768_v39 = vmax.f32 %v3253_v24, %v1716_v58  ;;  %v1667_v40 = vmax.f32 %v1373_v18, 0.0  ;;  %v1384_v52 = vadd.f32 %v2272_v31, %v2729_v8  ;;  %v3254_v28 = vmax.f32 %v2888_v12, 0.0  ;;  %v2276_v10 = vpop.f32.mrb[46].mxu0 }
 0x170   : > { %v2158_v49 = vpack.c.bf16 %v1796_v32, %v1796_v32  ;;  %1924 = vst.msk [vmem:[%s2984_s14 + $0x28] sm:$0xf] %vm1913_vm3, %v2155_v33  ;;  %v1719_v11 = vmax.f32 %v1581_v41, 0.0  ;;  %v1592_v56 = vadd.f32 %v2324_v7, %v2729_v8  ;;  %v3255_v30 = vmax.f32 %v2894_v22, 0.0 }
 0x171   : > { %v1794_v50 = vmax.f32 %v1742_v16, %v1768_v39  ;;  %v1747_v29 = vmax.f32 %v3254_v28, %v1669_v34  ;;  %v3256_v44 = vmax.f32 %v2842_v57, 0.0  ;;  %v1670_v20 = vmax.f32 %v1384_v52, 0.0  ;;  %v1391_v39 = vpop.f32.mrb[47].mxu0 }
 0x172   : > { %1927 = vst.msk [vmem:[%s2984_s14 + $0x34] sm:$0xf] %vm1913_vm3, %v2158_v49  ;;  %v1773_v19 = vmax.f32 %v3255_v30, %v1721_v48  ;;  %v1376_v25 = vadd.f32 %v2729_v8, %v1375_v38  ;;  %v3257_v61 = vmax.f32 %v2846_v62, 0.0  ;;  %v1722_v3 = vmax.f32 %v1592_v56, 0.0 }
 0x173   : > { %v1745_v26 = vmax.f32 %v3256_v44, %v1667_v40  ;;  %v2156_v5 = vpack.c.bf16 %v1794_v50, %v1794_v50  ;;  %v1584_v0 = vadd.f32 %v2729_v8, %v1583_v55  ;;  %v3118_v46 = vadd.f32 %v2729_v8, %v2944_v37  ;;  %v1596_v37 = vpop.f32.mrb[45].mxu1 }
 0x174   : > { %v1771_v12 = vmax.f32 %v3257_v61, %v1719_v11  ;;  %v1799_v53 = vmax.f32 %v1747_v29, %v1773_v19  ;;  %v3258_v22 = vmax.f32 %v2914_v21, 0.0  ;;  %v1668_v57 = vmax.f32 %v1376_v25, 0.0  ;;  %v2328_v18 = vpop.f32.mrb[46].mxu1  ;;  %v3264_v29 = vld [vmem:[#allocation3_spill] sm:$0xff]  ;;  %v3266_v61 = vld [vmem:[#allocation4_spill] sm:$0xff] }
 0x175   : > { %1925 = vst.msk [vmem:[%s2984_s14 + $0x2c] sm:$0xf] %vm1913_vm3, %v2156_v5  ;;  %v3259_v62 = vmax.f32 %v2919_v14, 0.0  ;;  %v1720_v58 = vmax.f32 %v1584_v0, 0.0  ;;  %v1397_v45 = vadd.f32 %v2275_v35, %v2729_v8  ;;  %v3260_v32 = vmax.f32 %v2866_v63, 0.0  ;;  %v1599_v34 = vpop.f32.mrb[47].mxu1 }
 0x176   : > { %v1748_v54 = vmax.f32 %v3258_v22, %v1670_v20  ;;  %v1797_v47 = vmax.f32 %v1745_v26, %v1771_v12  ;;  %v2161_v23 = vpack.c.bf16 %v1799_v53, %v1799_v53  ;;  %v1605_v9 = vadd.f32 %v2327_v13, %v2729_v8  ;;  %v2279_v53 = vpop.f32.mrb[48].mxu0  ;;  %v2331_v22 = vpop.f32.mrb[48].mxu1 }
 0x177   : > { %v1774_v36 = vmax.f32 %v3259_v62, %v1722_v3  ;;  %v1746_v21 = vmax.f32 %v3260_v32, %v1668_v57  ;;  %v1389_v16 = vadd.f32 %v2729_v8, %v1388_v15  ;;  %v3261_v7 = vmax.f32 %v2870_v4, 0.0  ;;  %v1612_v62 = vpop.f32.mrb[49].mxu1  ;;  %v3270_v32 = vld [vmem:[#allocation5_spill] sm:$0xff] }
 0x178   : > { %v2159_v31 = vpack.c.bf16 %v1797_v47, %v1797_v47  ;;  %v1673_v24 = vmax.f32 %v1397_v45, 0.0  ;;  %1930 = vst.msk [vmem:[%s2984_s14 + $0x40] sm:$0xf] %vm1913_vm3, %v2161_v23  ;;  %v1725_v63 = vmax.f32 %v1605_v9, 0.0  ;;  %v1597_v38 = vadd.f32 %v2729_v8, %v1596_v37  ;;  %v2332_v37 = vpop.f32.mrb[50].mxu1  ;;  %v3272_v9 = vld [vmem:[#allocation6_spill] sm:$0xff] }
 0x179   : > { %v1800_v14 = vmax.f32 %v1748_v54, %v1774_v36  ;;  %v1772_v33 = vmax.f32 %v3261_v7, %v1720_v58  ;;  %v1671_v41 = vmax.f32 %v1389_v16, 0.0  ;;  %v1400_v55 = vadd.f32 %v2276_v10, %v2729_v8 }
 0x17a   : > { %1928 = vst.msk [vmem:[%s2984_s14 + $0x38] sm:$0xf] %vm1913_vm3, %v2159_v31  ;;  %v3262_v40 = vmax.f32 %v2948_v1, 0.0  ;;  %v1608_v52 = vadd.f32 %v2328_v18, %v2729_v8  ;;  %v3263_v50 = vmax.f32 %v2951_v2, 0.0  ;;  %v3265_v11 = vmax.f32 %v3264_v29, 0.0 }
 0x17b   : > { %v2162_v49 = vpack.c.bf16 %v1800_v14, %v1800_v14  ;;  %v1798_v48 = vmax.f32 %v1746_v21, %v1772_v33  ;;  %v1723_v30 = vmax.f32 %v1597_v38, 0.0  ;;  %v1674_v19 = vmax.f32 %v1400_v55, 0.0  ;;  %v1615_v14 = vpop.f32.mrb[51].mxu1 }
 0x17c   : > { %v1751_v4 = vmax.f32 %v3262_v40, %v1673_v24  ;;  %v1777_v28 = vmax.f32 %v3263_v50, %v1725_v63  ;;  %v1749_v56 = vmax.f32 %v3265_v11, %v1671_v41  ;;  %v1726_v26 = vmax.f32 %v1608_v52, 0.0 }
 0x17d   : > { %1931 = vst.msk [vmem:[%s2984_s14 + $0x44] sm:$0xf] %vm1913_vm3, %v2162_v49  ;;  %v2160_v44 = vpack.c.bf16 %v1798_v48, %v1798_v48  ;;  %v1392_v20 = vadd.f32 %v2729_v8, %v1391_v39  ;;  %v1600_v1 = vadd.f32 %v2729_v8, %v1599_v34  ;;  %v1652_v25 = vmax.f32 %v3082_v6, 0.0  ;;  %v1404_v6 = vpop.f32.mrb[49].mxu0 }
 0x17e   : > { %v1803_v5 = vmax.f32 %v1751_v4, %v1777_v28  ;;  %v3267_v2 = vmax.f32 %v3266_v61, 0.0  ;;  %v3268_v3 = vmax.f32 %v2964_v60, 0.0  ;;  %v3269_v54 = vmax.f32 %v2967_v51, 0.0  ;;  %v2280_v15 = vpop.f32.mrb[50].mxu0 }
 0x17f   : > { %1929 = vst.msk [vmem:[%s2984_s14 + $0x3c] sm:$0xf] %vm1913_vm3, %v2160_v44  ;;  %v1672_v35 = vmax.f32 %v1392_v20, 0.0  ;;  %v1724_v13 = vmax.f32 %v1600_v1, 0.0  ;;  %v1413_v47 = vadd.f32 %v2279_v53, %v2729_v8  ;;  %v1621_v45 = vadd.f32 %v2331_v22, %v2729_v8  ;;  %v1407_v31 = vpop.f32.mrb[51].mxu0 }
 0x180   : > { %v1775_v12 = vmax.f32 %v3267_v2, %v1723_v30  ;;  %v1752_v0 = vmax.f32 %v3268_v3, %v1674_v19  ;;  %v1778_v57 = vmax.f32 %v3269_v54, %v1726_v26  ;;  %v2165_v36 = vpack.c.bf16 %v1803_v5, %v1803_v5  ;;  %v3278_v5 = vld [vmem:[#allocation8_spill] sm:$0xff] }
 0x181   : > { %v1405_v60 = vadd.f32 %v2729_v8, %v1404_v6  ;;  %v3271_v51 = vmax.f32 %v3270_v32, 0.0  ;;  %v3273_v16 = vmax.f32 %v3272_v9, 0.0  ;;  %v1677_v18 = vmax.f32 %v1413_v47, 0.0 }
 0x182   : > { %v1801_v58 = vmax.f32 %v1749_v56, %v1775_v12  ;;  %v1804_v23 = vmax.f32 %v1752_v0, %v1778_v57  ;;  %1934 = vst.msk [vmem:[%s2984_s14 + $0x50] sm:$0xf] %vm1913_vm3, %v2165_v36  ;;  %v1729_v33 = vmax.f32 %v1621_v45, 0.0  ;;  %v1613_v39 = vadd.f32 %v2729_v8, %v1612_v62  ;;  %v3277_v56 = vld [vmem:[#allocation9_spill] sm:$0xff] }
 0x183   : > { %v1750_v21 = vmax.f32 %v3271_v51, %v1672_v35  ;;  %v1776_v10 = vmax.f32 %v3273_v16, %v1724_v13  ;;  %v1675_v24 = vmax.f32 %v1405_v60, 0.0  ;;  %v1755_v41 = vmax.f32 %v1651_v43, %v1677_v18 }
 0x184   : > { %v2163_v7 = vpack.c.bf16 %v1801_v58, %v1801_v58  ;;  %v2166_v34 = vpack.c.bf16 %v1804_v23, %v1804_v23  ;;  %v1416_v38 = vadd.f32 %v2280_v15, %v2729_v8  ;;  %v1781_v55 = vmax.f32 %v1703_v42, %v1729_v33 }
 0x185   : > { %v1802_v63 = vmax.f32 %v1750_v21, %v1776_v10  ;;  %v3274_v49 = vmax.f32 %v2935_v59, 0.0  ;;  %v1727_v40 = vmax.f32 %v1613_v39, 0.0  ;;  %v1624_v4 = vadd.f32 %v2332_v37, %v2729_v8 }
 0x186   : > { %1932 = vst.msk [vmem:[%s2984_s14 + $0x48] sm:$0xf] %vm1913_vm3, %v2163_v7  ;;  %1935 = vst.msk [vmem:[%s2984_s14 + $0x54] sm:$0xf] %vm1913_vm3, %v2166_v34  ;;  %v1678_v50 = vmax.f32 %v1416_v38, 0.0  ;;  %v1408_v17 = vadd.f32 %v2729_v8, %v1407_v31  ;;  %v1616_v43 = vadd.f32 %v2729_v8, %v1615_v14  ;;  %v1704_v28 = vmax.f32 %v3118_v46, 0.0 }
 0x187   : > { %v1753_v48 = vmax.f32 %v3274_v49, %v1675_v24  ;;  %v2164_v52 = vpack.c.bf16 %v1802_v63, %v1802_v63  ;;  %v1807_v29 = vmax.f32 %v1755_v41, %v1781_v55  ;;  %v3276_v42 = vmax.f32 %v3275_v27, 0.0 }
 0x188   : > { %v1730_v59 = vmax.f32 %v1624_v4, 0.0  ;;  %v1702_v30 = vmax.f32 %v3277_v56, 0.0  ;;  %v1756_v19 = vmax.f32 %v1652_v25, %v1678_v50  ;;  %v1676_v44 = vmax.f32 %v1408_v17, 0.0 }
 0x189   : > { %v1779_v11 = vmax.f32 %v3276_v42, %v1727_v40  ;;  %1933 = vst.msk [vmem:[%s2984_s14 + $0x4c] sm:$0xf] %vm1913_vm3, %v2164_v52  ;;  %v1728_v26 = vmax.f32 %v1616_v43, 0.0  ;;  %v2169_v20 = vpack.c.bf16 %v1807_v29, %v1807_v29  ;;  %v3279_v46 = vmax.f32 %v3278_v5, 0.0 }
 0x18a   : > { %v1782_v8 = vmax.f32 %v1704_v28, %v1730_v59 }
 0x18b   : > { %v1805_v1 = vmax.f32 %v1753_v48, %v1779_v11  ;;  %v1754_v61 = vmax.f32 %v3279_v46, %v1676_v44  ;;  %v1780_v2 = vmax.f32 %v1702_v30, %v1728_v26  ;;  %1938 = vst.msk [vmem:[%s2984_s14 + $0x60] sm:$0xf] %vm1913_vm3, %v2169_v20 }
 0x18c   : > { %v1808_v3 = vmax.f32 %v1756_v19, %v1782_v8 }
 0x18d   : > { %v2167_v12 = vpack.c.bf16 %v1805_v1, %v1805_v1  ;;  %v1806_v0 = vmax.f32 %v1754_v61, %v1780_v2 }
 0x18e   : > { %v2170_v53 = vpack.c.bf16 %v1808_v3, %v1808_v3 }
 0x18f   : > { %1936 = vst.msk [vmem:[%s2984_s14 + $0x58] sm:$0xf] %vm1913_vm3, %v2167_v12  ;;  %v2168_v22 = vpack.c.bf16 %v1806_v0, %v1806_v0 }
 0x190   : > { %1939 = vst.msk [vmem:[%s2984_s14 + $0x64] sm:$0xf] %vm1913_vm3, %v2170_v53 }
 0x191   : > { %1937 = vst.msk [vmem:[%s2984_s14 + $0x5c] sm:$0xf] %vm1913_vm3, %v2168_v22 }
 0x192 PF: > { %p10_p9 = scmp.ge.s32.totalorder %s2480_s16, 4   ;;  %s3280_s12 = smov %s2436_s13 }
 0x193   : > { %s3281_s13 = smov %s2489_s19  ;;  %s3282_s14 = smov %s2480_s16 }
 0x194   :  { %12 = sbr.rel (!%p10_p9) target bundleno = 2 (0x2), region = 108 }

// kernel: fashion_mnist_cnn_forward.4
= control target key start
LH: loop header
LB: loop body
LE: loop exit
PB: predicated region body
PF: predicated region fallthrough
CT: control target
= control target key end

     0   :  { %s1867_s12 = smov 0   ;;  %s1869_s13 = smov 0   ;;  %s2344_s0 = inlined_call_operand.vmem [shape: bf16[4,128,400], index: 0, kind: input, shape index: {}]   ;;  %s2345_s1 = inlined_call_operand.vmem [shape: bf16[400,32], index: 1, kind: input, shape index: {}]   ;;  %s2346_s2 = inlined_call_operand.vmem [shape: f32[1,32], index: 2, kind: input, shape index: {}]   ;;  %s2347_s3 = inlined_call_operand.vmem [shape: bf16[128,32], index: 3, kind: output, shape index: {}]  }
   0x1   :  { %s1871_s14 = smov 0  }
   0x2 LB: > { %s1426_s15 = sadd.s32 4294967295, %s1844_s14   ;;  %s1884_s16 = sadd.s32 1, %s1844_s14   ;;  %s1844_s14 = sphi %s1871_s14, %s2350_s14   ;;  %s1840_s13 = sphi %s1869_s13, %s2349_s13   ;;  %s1836_s12 = sphi %s1867_s12, %s2348_s12  }
   0x3   : > { %s17_s17 = ssub.s32 %s1844_s14, %s1884_s16  ;;  %s20_s18 = sadd.s32 1, %s1840_s13 }
   0x4   : > { %p18_p0 = scmp.eq.s32.totalorder %s17_s17, 0  ;;  %p27_p1 = scmp.ne.s32.totalorder %s1840_s13, %s1836_s12 }
   0x5   : > { %p28_p2 = scmp.eq.s32.totalorder %s1844_s14, 0  ;;  %p1429_p4 = scmp.ge.s32.totalorder %s1844_s14, 2 }
   0x6   : > { %s1893_s19 = scalar_select %p18_p0, %s1840_s13, %s20_s18  }
   0x7   : > { %p29_p3 = por %p28_p2, %p27_p1  ;;  %127 = sbr.rel (%p1429_p4) target bundleno = 50 (0x32), region = 24 }
   0xe   : > { %130 = sbr.rel (!%p29_p3) target bundleno = 50 (0x32), region = 28  ;;  %s132_s20 = sand.u32 (%p29_p3), 1, %s1840_s13  }
   0xf   : > { %s1555_s21 = sshll.u32 (%p29_p3), %s1844_s14, 7  ;;  %s1430_s22 = sshll.u32 (%p29_p3), %s132_s20, 9 }
  0x10   : > { %s1901_s25 = scalar_lea.vmem (%p29_p3), %s2344_s0, %s1555_s21  ;;  %s1906_s26 = scalar_lea.vmem (%p29_p3), [#allocation2], %s1430_s22 }
  0x11   : > { %v151_v0 = vld [vmem:[%s1901_s25] sm:$0xff] (%p29_p3)  ;;  %v153_v1 = vld [vmem:[%s1901_s25 + $0x8] sm:$0xff] (%p29_p3)  ;;  %v155_v2 = vld [vmem:[%s1901_s25 + $0x10] sm:$0xff] (%p29_p3) }
  0x12   : > { %152 = vst [vmem:[%s1906_s26] sm:$0xff] (%p29_p3), %v151_v0  ;;  %154 = vst [vmem:[%s1906_s26 + $0x8] sm:$0xff] (%p29_p3), %v153_v1  ;;  %v157_v3 = vld [vmem:[%s1901_s25 + $0x18] sm:$0xff] (%p29_p3)  ;;  %v159_v4 = vld [vmem:[%s1901_s25 + $0x20] sm:$0xff] (%p29_p3) }
  0x13   : > { %156 = vst [vmem:[%s1906_s26 + $0x10] sm:$0xff] (%p29_p3), %v155_v2  ;;  %v161_v5 = vld [vmem:[%s1901_s25 + $0x28] sm:$0xff] (%p29_p3)  ;;  %158 = vst [vmem:[%s1906_s26 + $0x18] sm:$0xff] (%p29_p3), %v157_v3  ;;  %v163_v6 = vld [vmem:[%s1901_s25 + $0x30] sm:$0xff] (%p29_p3) }
  0x14   : > { %160 = vst [vmem:[%s1906_s26 + $0x20] sm:$0xff] (%p29_p3), %v159_v4  ;;  %162 = vst [vmem:[%s1906_s26 + $0x28] sm:$0xff] (%p29_p3), %v161_v5  ;;  %v165_v7 = vld [vmem:[%s1901_s25 + $0x38] sm:$0xff] (%p29_p3)  ;;  %v167_v8 = vld [vmem:[%s1901_s25 + $0x40] sm:$0xff] (%p29_p3) }
  0x15   : > { %164 = vst [vmem:[%s1906_s26 + $0x30] sm:$0xff] %v163_v6  ;;  %166 = vst [vmem:[%s1906_s26 + $0x38] sm:$0xff] %v165_v7  ;;  %v169_v9 = vld [vmem:[%s1901_s25 + $0x48] sm:$0xff]  ;;  %v171_v10 = vld [vmem:[%s1901_s25 + $0x50] sm:$0xff] }
  0x16   : > { %168 = vst [vmem:[%s1906_s26 + $0x40] sm:$0xff] %v167_v8  ;;  %v173_v11 = vld [vmem:[%s1901_s25 + $0x58] sm:$0xff]  ;;  %170 = vst [vmem:[%s1906_s26 + $0x48] sm:$0xff] %v169_v9  ;;  %v175_v12 = vld [vmem:[%s1901_s25 + $0x60] sm:$0xff] }
  0x17   : > { %172 = vst [vmem:[%s1906_s26 + $0x50] sm:$0xff] %v171_v10  ;;  %174 = vst [vmem:[%s1906_s26 + $0x58] sm:$0xff] %v173_v11  ;;  %v177_v13 = vld [vmem:[%s1901_s25 + $0x68] sm:$0xff]  ;;  %v179_v14 = vld [vmem:[%s1901_s25 + $0x70] sm:$0xff] }
  0x18   : > { %176 = vst [vmem:[%s1906_s26 + $0x60] sm:$0xff] %v175_v12  ;;  %178 = vst [vmem:[%s1906_s26 + $0x68] sm:$0xff] %v177_v13  ;;  %v181_v15 = vld [vmem:[%s1901_s25 + $0x78] sm:$0xff]  ;;  %v183_v16 = vld [vmem:[%s1901_s25 + $0x100] sm:$0xff] }
  0x19   : > { %180 = vst [vmem:[%s1906_s26 + $0x70] sm:$0xff] %v179_v14  ;;  %v185_v17 = vld [vmem:[%s1901_s25 + $0x108] sm:$0xff]  ;;  %182 = vst [vmem:[%s1906_s26 + $0x78] sm:$0xff] %v181_v15  ;;  %v187_v18 = vld [vmem:[%s1901_s25 + $0x110] sm:$0xff] }
  0x1a   : > { %184 = vst [vmem:[%s1906_s26 + $0x80] sm:$0xff] %v183_v16  ;;  %186 = vst [vmem:[%s1906_s26 + $0x88] sm:$0xff] %v185_v17  ;;  %v189_v19 = vld [vmem:[%s1901_s25 + $0x118] sm:$0xff]  ;;  %v191_v20 = vld [vmem:[%s1901_s25 + $0x120] sm:$0xff] }
  0x1b   : > { %188 = vst [vmem:[%s1906_s26 + $0x90] sm:$0xff] %v187_v18  ;;  %190 = vst [vmem:[%s1906_s26 + $0x98] sm:$0xff] %v189_v19  ;;  %v193_v21 = vld [vmem:[%s1901_s25 + $0x128] sm:$0xff]  ;;  %v195_v22 = vld [vmem:[%s1901_s25 + $0x130] sm:$0xff] }
  0x1c   : > { %192 = vst [vmem:[%s1906_s26 + $0xa0] sm:$0xff] %v191_v20  ;;  %v197_v23 = vld [vmem:[%s1901_s25 + $0x138] sm:$0xff]  ;;  %194 = vst [vmem:[%s1906_s26 + $0xa8] sm:$0xff] %v193_v21  ;;  %v199_v24 = vld [vmem:[%s1901_s25 + $0x140] sm:$0xff] }
  0x1d   : > { %196 = vst [vmem:[%s1906_s26 + $0xb0] sm:$0xff] %v195_v22  ;;  %198 = vst [vmem:[%s1906_s26 + $0xb8] sm:$0xff] %v197_v23  ;;  %v201_v25 = vld [vmem:[%s1901_s25 + $0x148] sm:$0xff]  ;;  %v203_v26 = vld [vmem:[%s1901_s25 + $0x150] sm:$0xff] }
  0x1e   : > { %200 = vst [vmem:[%s1906_s26 + $0xc0] sm:$0xff] %v199_v24  ;;  %202 = vst [vmem:[%s1906_s26 + $0xc8] sm:$0xff] %v201_v25  ;;  %v205_v27 = vld [vmem:[%s1901_s25 + $0x158] sm:$0xff]  ;;  %v207_v28 = vld [vmem:[%s1901_s25 + $0x160] sm:$0xff] }
  0x1f   : > { %204 = vst [vmem:[%s1906_s26 + $0xd0] sm:$0xff] %v203_v26  ;;  %v209_v29 = vld [vmem:[%s1901_s25 + $0x168] sm:$0xff]  ;;  %206 = vst [vmem:[%s1906_s26 + $0xd8] sm:$0xff] %v205_v27  ;;  %v211_v30 = vld [vmem:[%s1901_s25 + $0x170] sm:$0xff] }
  0x20   : > { %208 = vst [vmem:[%s1906_s26 + $0xe0] sm:$0xff] %v207_v28  ;;  %210 = vst [vmem:[%s1906_s26 + $0xe8] sm:$0xff] %v209_v29  ;;  %v213_v31 = vld [vmem:[%s1901_s25 + $0x178] sm:$0xff]  ;;  %v215_v32 = vld [vmem:[%s1901_s25 + $0x200] sm:$0xff] }
  0x21   : > { %212 = vst [vmem:[%s1906_s26 + $0xf0] sm:$0xff] %v211_v30  ;;  %214 = vst [vmem:[%s1906_s26 + $0xf8] sm:$0xff] %v213_v31  ;;  %v217_v33 = vld [vmem:[%s1901_s25 + $0x208] sm:$0xff]  ;;  %v219_v34 = vld [vmem:[%s1901_s25 + $0x210] sm:$0xff] }
  0x22   : > { %216 = vst [vmem:[%s1906_s26 + $0x100] sm:$0xff] %v215_v32  ;;  %v221_v35 = vld [vmem:[%s1901_s25 + $0x218] sm:$0xff]  ;;  %218 = vst [vmem:[%s1906_s26 + $0x108] sm:$0xff] %v217_v33  ;;  %v223_v36 = vld [vmem:[%s1901_s25 + $0x220] sm:$0xff] }
  0x23   : > { %220 = vst [vmem:[%s1906_s26 + $0x110] sm:$0xff] %v219_v34  ;;  %222 = vst [vmem:[%s1906_s26 + $0x118] sm:$0xff] %v221_v35  ;;  %v225_v37 = vld [vmem:[%s1901_s25 + $0x228] sm:$0xff]  ;;  %v227_v38 = vld [vmem:[%s1901_s25 + $0x230] sm:$0xff] }
  0x24   : > { %224 = vst [vmem:[%s1906_s26 + $0x120] sm:$0xff] %v223_v36  ;;  %226 = vst [vmem:[%s1906_s26 + $0x128] sm:$0xff] %v225_v37  ;;  %v229_v39 = vld [vmem:[%s1901_s25 + $0x238] sm:$0xff]  ;;  %v231_v40 = vld [vmem:[%s1901_s25 + $0x240] sm:$0xff] }
  0x25   : > { %228 = vst [vmem:[%s1906_s26 + $0x130] sm:$0xff] %v227_v38  ;;  %v233_v41 = vld [vmem:[%s1901_s25 + $0x248] sm:$0xff]  ;;  %230 = vst [vmem:[%s1906_s26 + $0x138] sm:$0xff] %v229_v39  ;;  %v235_v42 = vld [vmem:[%s1901_s25 + $0x250] sm:$0xff] }
  0x26   : > { %232 = vst [vmem:[%s1906_s26 + $0x140] sm:$0xff] %v231_v40  ;;  %234 = vst [vmem:[%s1906_s26 + $0x148] sm:$0xff] %v233_v41  ;;  %v237_v43 = vld [vmem:[%s1901_s25 + $0x258] sm:$0xff]  ;;  %v239_v44 = vld [vmem:[%s1901_s25 + $0x260] sm:$0xff] }
  0x27   : > { %236 = vst [vmem:[%s1906_s26 + $0x150] sm:$0xff] %v235_v42  ;;  %238 = vst [vmem:[%s1906_s26 + $0x158] sm:$0xff] %v237_v43  ;;  %v241_v45 = vld [vmem:[%s1901_s25 + $0x268] sm:$0xff]  ;;  %v243_v46 = vld [vmem:[%s1901_s25 + $0x270] sm:$0xff] }
  0x28   : > { %240 = vst [vmem:[%s1906_s26 + $0x160] sm:$0xff] %v239_v44  ;;  %v245_v47 = vld [vmem:[%s1901_s25 + $0x278] sm:$0xff]  ;;  %242 = vst [vmem:[%s1906_s26 + $0x168] sm:$0xff] %v241_v45  ;;  %v247_v48 = vld [vmem:[%s1901_s25 + $0x300] sm:$0xff] }
  0x29   : > { %244 = vst [vmem:[%s1906_s26 + $0x170] sm:$0xff] %v243_v46  ;;  %246 = vst [vmem:[%s1906_s26 + $0x178] sm:$0xff] %v245_v47  ;;  %v249_v49 = vld [vmem:[%s1901_s25 + $0x308] sm:$0xff]  ;;  %v251_v50 = vld [vmem:[%s1901_s25 + $0x310] sm:$0xff] }
  0x2a   : > { %248 = vst [vmem:[%s1906_s26 + $0x180] sm:$0xff] %v247_v48  ;;  %250 = vst [vmem:[%s1906_s26 + $0x188] sm:$0xff] %v249_v49  ;;  %v253_v51 = vld [vmem:[%s1901_s25 + $0x318] sm:$0xff]  ;;  %v255_v52 = vld [vmem:[%s1901_s25 + $0x320] sm:$0xff] }
  0x2b   : > { %252 = vst [vmem:[%s1906_s26 + $0x190] sm:$0xff] %v251_v50  ;;  %v257_v53 = vld [vmem:[%s1901_s25 + $0x328] sm:$0xff]  ;;  %254 = vst [vmem:[%s1906_s26 + $0x198] sm:$0xff] %v253_v51  ;;  %v259_v54 = vld [vmem:[%s1901_s25 + $0x330] sm:$0xff] }
  0x2c   : > { %256 = vst [vmem:[%s1906_s26 + $0x1a0] sm:$0xff] %v255_v52  ;;  %258 = vst [vmem:[%s1906_s26 + $0x1a8] sm:$0xff] %v257_v53  ;;  %v261_v55 = vld [vmem:[%s1901_s25 + $0x338] sm:$0xff]  ;;  %v263_v56 = vld [vmem:[%s1901_s25 + $0x340] sm:$0xff] }
  0x2d   : > { %260 = vst [vmem:[%s1906_s26 + $0x1b0] sm:$0xff] %v259_v54  ;;  %262 = vst [vmem:[%s1906_s26 + $0x1b8] sm:$0xff] %v261_v55  ;;  %v265_v57 = vld [vmem:[%s1901_s25 + $0x348] sm:$0xff]  ;;  %v267_v58 = vld [vmem:[%s1901_s25 + $0x350] sm:$0xff] }
  0x2e   : > { %264 = vst [vmem:[%s1906_s26 + $0x1c0] sm:$0xff] %v263_v56  ;;  %v269_v59 = vld [vmem:[%s1901_s25 + $0x358] sm:$0xff]  ;;  %266 = vst [vmem:[%s1906_s26 + $0x1c8] sm:$0xff] %v265_v57  ;;  %v271_v60 = vld [vmem:[%s1901_s25 + $0x360] sm:$0xff] }
  0x2f   : > { %268 = vst [vmem:[%s1906_s26 + $0x1d0] sm:$0xff] %v267_v58  ;;  %270 = vst [vmem:[%s1906_s26 + $0x1d8] sm:$0xff] %v269_v59  ;;  %v273_v61 = vld [vmem:[%s1901_s25 + $0x368] sm:$0xff]  ;;  %v275_v62 = vld [vmem:[%s1901_s25 + $0x370] sm:$0xff] }
  0x30   : > { %272 = vst [vmem:[%s1906_s26 + $0x1e0] sm:$0xff] %v271_v60  ;;  %274 = vst [vmem:[%s1906_s26 + $0x1e8] sm:$0xff] %v273_v61  ;;  %v277_v63 = vld [vmem:[%s1901_s25 + $0x378] sm:$0xff] }
  0x31   : > { %276 = vst [vmem:[%s1906_s26 + $0x1f0] sm:$0xff] %v275_v62  ;;  %278 = vst [vmem:[%s1906_s26 + $0x1f8] sm:$0xff] %v277_v63 }
  0x32 PF: > { %p1434_p5 = scmp.ge.s32.totalorder %s1844_s14, 1  ;;  %p283_p6 = scmp.lt.s32.totalorder %s1844_s14, 3 }
  0x34   : > { %p284_p7 = pnand %p1434_p5, %p283_p6 }
  0x35   : > { %v1701_v0 = vld [vmem:[%s2345_s1 + $0x40] sm:$0xff] (!%p284_p7)   ;;  %v1846_v1 = vmov (!%p284_p7), 0   ;;  %v1704_v4 = vld [vmem:[%s2345_s1 + $0x48] sm:$0xff] (!%p284_p7)   ;;  %v1707_v7 = vld [vmem:[%s2345_s1 + $0x50] sm:$0xff] (!%p284_p7)   ;;  %s290_s9 = sand.u32 (!%p284_p7), 1, %s1836_s12   ;;  %vm896_vm0 = vcmask (!%p284_p7), 130048  }
  0x36   : > { %287 = sbr.rel (%p284_p7) target bundleno = 437 (0x1b5), region = 51  ;;  %1106 = vmatprep.subr.bf16.mxu1 (!%p284_p7), %v1846_v1  ;;  %v1702_v2 = vld [vmem:[%s2345_s1 + $0x80] sm:$0xff] (!%p284_p7)   ;;  %1564 = vmatprep.subr.bf16.mxu0 (!%p284_p7), %v1701_v0  ;;  %v1705_v5 = vld [vmem:[%s2345_s1 + $0x88] sm:$0xff] (!%p284_p7)   ;;  %v1708_v8 = vld [vmem:[%s2345_s1 + $0x90] sm:$0xff] (!%p284_p7)   ;;  %s1435_s20 = sshll.u32 (!%p284_p7), %s290_s9, 9  ;;  %vm1355_vm1 = vcmask (!%p284_p7), 257024  }
  0x37   : > { %v1703_v3 = vld [vmem:[%s2345_s1] sm:$0xff] (!%p284_p7)   ;;  %1107 = vmatpush1.bf16.msra.mxu1 (!%p284_p7), %v1702_v2  ;;  %v1706_v6 = vld [vmem:[%s2345_s1 + $0x8] sm:$0xff] (!%p284_p7)   ;;  %v1709_v9 = vld [vmem:[%s2345_s1 + $0x10] sm:$0xff] (!%p284_p7)   ;;  %s2109_s30 = scalar_lea.vmem (!%p284_p7), [#allocation2], %s1435_s20  ;;  %s1436_s17 = sshll.u32 (!%p284_p7), %s1426_s15, 3 }
  0x38   : > { %1565 = vmatpush3.bf16.msra.mxu0 (!%p284_p7), %v1703_v3  ;;  %1108 = vmatprep.subr.bf16.mxu1 (!%p284_p7), %v1846_v1  ;;  %v1710_v10 = vld [vmem:[%s2345_s1 + $0x58] sm:$0xff] (!%p284_p7)   ;;  %v1713_v13 = vld [vmem:[%s2345_s1 + $0x60] sm:$0xff] (!%p284_p7)   ;;  %v1716_v16 = vld [vmem:[%s2345_s1 + $0x68] sm:$0xff] (!%p284_p7)   ;;  %p315_p8 = scmp.lt.s32.totalorder (!%p284_p7), %s1436_s17, 15 }
  0x39   : > { %1566 = vmatprep.subr.bf16.mxu0 (!%p284_p7), %v1704_v4  ;;  %v1711_v11 = vld [vmem:[%s2345_s1 + $0x98] sm:$0xff] (!%p284_p7)   ;;  %v1714_v14 = vld [vmem:[%s2345_s1 + $0xa0] sm:$0xff] (!%p284_p7)   ;;  %v1717_v17 = vld [vmem:[%s2345_s1 + $0xa8] sm:$0xff] (!%p284_p7)  }
  0x3a   : > { %v1712_v12 = vld [vmem:[%s2345_s1 + $0x18] sm:$0xff] (!%p284_p7)   ;;  %v1715_v15 = vld [vmem:[%s2345_s1 + $0x20] sm:$0xff] (!%p284_p7)   ;;  %v1718_v18 = vld [vmem:[%s2345_s1 + $0x28] sm:$0xff] (!%p284_p7)  }
  0x3b   : > { %1109 = vmatpush1.bf16.msra.mxu1 (!%p284_p7), %v1705_v5  ;;  %v1719_v19 = vld [vmem:[%s2345_s1 + $0x70] sm:$0xff] (!%p284_p7)   ;;  %v1722_v22 = vld [vmem:[%s2345_s1 + $0x78] sm:$0xff] (!%p284_p7)   ;;  %v1728_v28 = vld [vmem:[%s2345_s1 + $0xc0] sm:$0xff] (!%p284_p7)  }
  0x3c   : > { %1567 = vmatpush3.bf16.msra.mxu0 (!%p284_p7), %v1706_v6  ;;  %1110 = vmatprep.subr.bf16.mxu1 (!%p284_p7), %v1846_v1  ;;  %v1720_v20 = vld [vmem:[%s2345_s1 + $0xb0] sm:$0xff] (!%p284_p7)   ;;  %v1723_v24 = vld [vmem:[%s2345_s1 + $0xb8] sm:$0xff] (!%p284_p7)  }
  0x3d   : > { %1568 = vmatprep.subr.bf16.mxu0 %v1707_v7  ;;  %v1721_v21 = vld [vmem:[%s2345_s1 + $0x30] sm:$0xff]   ;;  %v1731_v25 = vld [vmem:[%s2109_s30 + $0xc] ss:$16 sps:$4 sm:$0xff]   ;;  %v1729_v30 = vld [vmem:[%s2109_s30 + $0x8] ss:$16 sps:$4 sm:$0xff]   ;;  %s2352_s17 = smov (!%p315_p8, %s1436_s17), 15 }
  0x3e   : > { %v1727_v23 = vld [vmem:[%s2109_s30 + $0x4] ss:$16 sps:$4 sm:$0xff]   ;;  %v1724_v26 = vld [vmem:[%s2345_s1 + $0x38] sm:$0xff]   ;;  %1528 = vmatprep.mubr.msk.bf16.mxu1 %vm896_vm0, %v1731_v25  ;;  %v1725_v27 = vld [vmem:[%s2109_s30] ss:$16 sps:$4 sm:$0xff]   ;;  %s1437_s14 = sshll.u32 %s2352_s17, 2 }
  0x3f   : > { %1111 = vmatpush1.bf16.msra.mxu1 %v1708_v8  ;;  %977 = vmatprep.mubr.bf16.mxu0 %v1727_v23  ;;  %v1732_v29 = vld [vmem:[%s2109_s30 + $0x24] ss:$16 sps:$4 sm:$0xff]   ;;  %v1735_v31 = vld [vmem:[%s2109_s30 + $0x2c] ss:$16 sps:$4 sm:$0xff]   ;;  %v1734_v32 = vld [vmem:[%s2109_s30 + $0x20] ss:$16 sps:$4 sm:$0xff]   ;;  %s2298_s20 = scalar_lea.vmem %s2347_s3, %s1437_s14 }
  0x40   : > { %1569 = vmatpush3.bf16.msra.mxu0 %v1709_v9  ;;  %1112 = vmatprep.subr.bf16.mxu1 %v1846_v1  ;;  %v1738_v33 = vld [vmem:[%s2109_s30 + $0x44] ss:$16 sps:$4 sm:$0xff]   ;;  %v1737_v34 = vld [vmem:[%s2109_s30 + $0x28] ss:$16 sps:$4 sm:$0xff]   ;;  %v1741_v35 = vld [vmem:[%s2109_s30 + $0x4c] ss:$16 sps:$4 sm:$0xff]  }
  0x41   : > { %1570 = vmatprep.subr.bf16.mxu0 %v1710_v10  ;;  %v1740_v36 = vld [vmem:[%s2109_s30 + $0x40] ss:$16 sps:$4 sm:$0xff]   ;;  %v1744_v37 = vld [vmem:[%s2109_s30 + $0x64] ss:$16 sps:$4 sm:$0xff]   ;;  %v1743_v38 = vld [vmem:[%s2109_s30 + $0x48] ss:$16 sps:$4 sm:$0xff]  }
  0x42   : > { %v1747_v39 = vld [vmem:[%s2109_s30 + $0x6c] ss:$16 sps:$4 sm:$0xff]   ;;  %v1746_v40 = vld [vmem:[%s2109_s30 + $0x60] ss:$16 sps:$4 sm:$0xff]   ;;  %v1750_v41 = vld [vmem:[%s2109_s30 + $0x84] ss:$16 sps:$4 sm:$0xff]  }
  0x43   : > { %1113 = vmatpush1.bf16.msra.mxu1 %v1711_v11  ;;  %v1749_v42 = vld [vmem:[%s2109_s30 + $0x68] ss:$16 sps:$4 sm:$0xff]   ;;  %v1753_v43 = vld [vmem:[%s2109_s30 + $0x8c] ss:$16 sps:$4 sm:$0xff]   ;;  %v1752_v44 = vld [vmem:[%s2109_s30 + $0x80] ss:$16 sps:$4 sm:$0xff]  }
  0x44   : > { %1571 = vmatpush3.bf16.msra.mxu0 %v1712_v12  ;;  %1114 = vmatprep.subr.bf16.mxu1 %v1846_v1  ;;  %v1756_v45 = vld [vmem:[%s2109_s30 + $0xa4] ss:$16 sps:$4 sm:$0xff]   ;;  %v1755_v46 = vld [vmem:[%s2109_s30 + $0x88] ss:$16 sps:$4 sm:$0xff]   ;;  %v1759_v47 = vld [vmem:[%s2109_s30 + $0xac] ss:$16 sps:$4 sm:$0xff]  }
  0x45   : > { %1572 = vmatprep.subr.bf16.mxu0 %v1713_v13  ;;  %v1758_v48 = vld [vmem:[%s2109_s30 + $0xa0] ss:$16 sps:$4 sm:$0xff]   ;;  %v1762_v49 = vld [vmem:[%s2109_s30 + $0xc4] ss:$16 sps:$4 sm:$0xff]   ;;  %v1761_v50 = vld [vmem:[%s2109_s30 + $0xa8] ss:$16 sps:$4 sm:$0xff]  }
  0x46   : > { %v1765_v51 = vld [vmem:[%s2109_s30 + $0xcc] ss:$16 sps:$4 sm:$0xff]   ;;  %v1764_v52 = vld [vmem:[%s2109_s30 + $0xc0] ss:$16 sps:$4 sm:$0xff]   ;;  %v1768_v53 = vld [vmem:[%s2109_s30 + $0xe4] ss:$16 sps:$4 sm:$0xff]  }
  0x47   : > { %1115 = vmatpush1.bf16.msra.mxu1 %v1714_v14  ;;  %v1767_v54 = vld [vmem:[%s2109_s30 + $0xc8] ss:$16 sps:$4 sm:$0xff]   ;;  %v1771_v55 = vld [vmem:[%s2109_s30 + $0xec] ss:$16 sps:$4 sm:$0xff]   ;;  %v1770_v56 = vld [vmem:[%s2109_s30 + $0xe0] ss:$16 sps:$4 sm:$0xff]  }
  0x48   : > { %1573 = vmatpush3.bf16.msra.mxu0 %v1715_v15  ;;  %1116 = vmatprep.subr.bf16.mxu1 %v1846_v1  ;;  %v1774_v57 = vld [vmem:[%s2109_s30 + $0x104] ss:$16 sps:$4 sm:$0xff]   ;;  %v1773_v58 = vld [vmem:[%s2109_s30 + $0xe8] ss:$16 sps:$4 sm:$0xff]   ;;  %v1777_v59 = vld [vmem:[%s2109_s30 + $0x10c] ss:$16 sps:$4 sm:$0xff]  }
  0x49   : > { %1574 = vmatprep.subr.bf16.mxu0 %v1716_v16  ;;  %v1776_v60 = vld [vmem:[%s2109_s30 + $0x100] ss:$16 sps:$4 sm:$0xff]   ;;  %v1780_v61 = vld [vmem:[%s2109_s30 + $0x124] ss:$16 sps:$4 sm:$0xff]   ;;  %v1779_v62 = vld [vmem:[%s2109_s30 + $0x108] ss:$16 sps:$4 sm:$0xff]  }
  0x4a   : > { %v1783_v63 = vld [vmem:[%s2109_s30 + $0x12c] ss:$16 sps:$4 sm:$0xff]   ;;  %v1782_v0 = vld [vmem:[%s2109_s30 + $0x120] ss:$16 sps:$4 sm:$0xff]   ;;  %v1785_v2 = vld [vmem:[%s2109_s30 + $0x128] ss:$16 sps:$4 sm:$0xff]  }
  0x4b   : > { %1117 = vmatpush1.bf16.msra.mxu1 %v1717_v17  ;;  %v1789_v3 = vld [vmem:[%s2109_s30 + $0x14c] ss:$16 sps:$4 sm:$0xff]   ;;  %v1788_v4 = vld [vmem:[%s2109_s30 + $0x140] ss:$16 sps:$4 sm:$0xff]   ;;  %v1792_v5 = vld [vmem:[%s2109_s30 + $0x164] ss:$16 sps:$4 sm:$0xff]  }
  0x4c   : > { %1575 = vmatpush3.bf16.msra.mxu0 %v1718_v18  ;;  %1118 = vmatprep.subr.bf16.mxu1 %v1846_v1  ;;  %v1791_v6 = vld [vmem:[%s2109_s30 + $0x148] ss:$16 sps:$4 sm:$0xff]   ;;  %v1795_v7 = vld [vmem:[%s2109_s30 + $0x16c] ss:$16 sps:$4 sm:$0xff]   ;;  %v1794_v8 = vld [vmem:[%s2109_s30 + $0x160] ss:$16 sps:$4 sm:$0xff]  }
  0x4d   : > { %1576 = vmatprep.subr.bf16.mxu0 %v1719_v19  ;;  %v1798_v9 = vld [vmem:[%s2109_s30 + $0x184] ss:$16 sps:$4 sm:$0xff]   ;;  %v1797_v10 = vld [vmem:[%s2109_s30 + $0x168] ss:$16 sps:$4 sm:$0xff]   ;;  %v1801_v11 = vld [vmem:[%s2109_s30 + $0x18c] ss:$16 sps:$4 sm:$0xff]  }
  0x4e   : > { %v1800_v12 = vld [vmem:[%s2109_s30 + $0x180] ss:$16 sps:$4 sm:$0xff]   ;;  %v1804_v13 = vld [vmem:[%s2109_s30 + $0x1a4] ss:$16 sps:$4 sm:$0xff]   ;;  %v1803_v14 = vld [vmem:[%s2109_s30 + $0x188] ss:$16 sps:$4 sm:$0xff]  }
  0x4f   : > { %1119 = vmatpush1.bf16.msra.mxu1 %v1720_v20  ;;  %v1807_v15 = vld [vmem:[%s2109_s30 + $0x1ac] ss:$16 sps:$4 sm:$0xff]   ;;  %v1806_v16 = vld [vmem:[%s2109_s30 + $0x1a0] ss:$16 sps:$4 sm:$0xff]   ;;  %v1810_v17 = vld [vmem:[%s2109_s30 + $0x1c4] ss:$16 sps:$4 sm:$0xff]  }
  0x50   : > { %1577 = vmatpush3.bf16.msra.mxu0 %v1721_v21  ;;  %1120 = vmatprep.subr.bf16.mxu1 %v1846_v1  ;;  %v1809_v18 = vld [vmem:[%s2109_s30 + $0x1a8] ss:$16 sps:$4 sm:$0xff]   ;;  %v1813_v19 = vld [vmem:[%s2109_s30 + $0x1cc] ss:$16 sps:$4 sm:$0xff]   ;;  %v1812_v20 = vld [vmem:[%s2109_s30 + $0x1c0] ss:$16 sps:$4 sm:$0xff]  }
  0x51   : > { %1578 = vmatprep.subr.bf16.mxu0 %v1722_v22  ;;  %v1816_v21 = vld [vmem:[%s2109_s30 + $0x1e4] ss:$16 sps:$4 sm:$0xff]   ;;  %v1815_v22 = vld [vmem:[%s2109_s30 + $0x1c8] ss:$16 sps:$4 sm:$0xff]   ;;  %v1819_v23 = vld [vmem:[%s2109_s30 + $0x1ec] ss:$16 sps:$4 sm:$0xff]  }
  0x52   : > { %v1821_v25 = vld [vmem:[%s2109_s30 + $0x1e8] ss:$16 sps:$4 sm:$0xff]  }
  0x53   : > { %1121 = vmatpush1.bf16.msra.mxu1 %v1723_v24  ;;  %v1818_v24 = vld [vmem:[%s2109_s30 + $0x1e0] ss:$16 sps:$4 sm:$0xff]  }
  0x54   : > { %1579 = vmatpush3.bf16.msra.mxu0 %v1724_v26  ;;  %1122 = vmatprep.subr.bf16.mxu1 %v1846_v1  ;;  %v1786_v1 = vld [vmem:[%s2109_s30 + $0x144] ss:$16 sps:$4 sm:$0xff]  }
  0x57   : > { %978 = vmatmul.mubr.bf16.vlgmr.msra.gmra.mrb[0].mxu0 %v1725_v27  ;;  %1123 = vmatpush1.bf16.msra.mxu1 %v1728_v28  ;;  %v2205_v28 = vld [vmem:[%s2346_s2] ss:$0 sm:$0xff] }
  0x58   : > { %985 = vmatprep.mubr.bf16.mxu0 %v1732_v29 }
  0x5a   : > { %1139 = vmatmul.mubr.bf16.vlgmr.msra.gmra.mrb[0].mxu1 %v1729_v30 }
  0x5b   : > { %1529 = vmatprep.mubr.msk.bf16.mxu1 %vm896_vm0, %v1735_v31 }
  0x5f   : > { %986 = vmatmul.mubr.bf16.gmra.mrb[4].mxu0 %v1734_v32 }
  0x60   : > { %993 = vmatprep.mubr.bf16.mxu0 %v1738_v33 }
  0x62   : > { %1147 = vmatmul.mubr.bf16.gmra.mrb[4].mxu1 %v1737_v34 }
  0x63   : > { %1530 = vmatprep.mubr.msk.bf16.mxu1 %vm896_vm0, %v1741_v35 }
  0x67   : > { %994 = vmatmul.mubr.bf16.gmra.mrb[8].mxu0 %v1740_v36 }
  0x68   : > { %1001 = vmatprep.mubr.bf16.mxu0 %v1744_v37 }
  0x6a   : > { %1155 = vmatmul.mubr.bf16.gmra.mrb[8].mxu1 %v1743_v38 }
  0x6b   : > { %1531 = vmatprep.mubr.msk.bf16.mxu1 %vm896_vm0, %v1747_v39 }
  0x6f   : > { %1002 = vmatmul.mubr.bf16.gmra.mrb[12].mxu0 %v1746_v40 }
  0x70   : > { %1009 = vmatprep.mubr.bf16.mxu0 %v1750_v41 }
  0x72   : > { %1163 = vmatmul.mubr.bf16.gmra.mrb[12].mxu1 %v1749_v42 }
  0x73   : > { %1532 = vmatprep.mubr.msk.bf16.mxu1 %vm896_vm0, %v1753_v43 }
  0x77   : > { %1010 = vmatmul.mubr.bf16.gmra.mrb[16].mxu0 %v1752_v44 }
  0x78   : > { %1017 = vmatprep.mubr.bf16.mxu0 %v1756_v45 }
  0x7a   : > { %1171 = vmatmul.mubr.bf16.gmra.mrb[16].mxu1 %v1755_v46 }
  0x7b   : > { %1533 = vmatprep.mubr.msk.bf16.mxu1 %vm896_vm0, %v1759_v47 }
  0x7f   : > { %1018 = vmatmul.mubr.bf16.gmra.mrb[20].mxu0 %v1758_v48 }
  0x80   : > { %1025 = vmatprep.mubr.bf16.mxu0 %v1762_v49 }
  0x82   : > { %1179 = vmatmul.mubr.bf16.gmra.mrb[20].mxu1 %v1761_v50 }
  0x83   : > { %1534 = vmatprep.mubr.msk.bf16.mxu1 %vm896_vm0, %v1765_v51 }
  0x87   : > { %1026 = vmatmul.mubr.bf16.gmra.mrb[24].mxu0 %v1764_v52 }
  0x88   : > { %1033 = vmatprep.mubr.bf16.mxu0 %v1768_v53 }
  0x8a   : > { %1187 = vmatmul.mubr.bf16.gmra.mrb[24].mxu1 %v1767_v54 }
  0x8b   : > { %1535 = vmatprep.mubr.msk.bf16.mxu1 %vm896_vm0, %v1771_v55 }
  0x8f   : > { %1034 = vmatmul.mubr.bf16.gmra.mrb[28].mxu0 %v1770_v56 }
  0x90   : > { %1041 = vmatprep.mubr.bf16.mxu0 %v1774_v57 }
  0x92   : > { %1195 = vmatmul.mubr.bf16.gmra.mrb[28].mxu1 %v1773_v58 }
  0x93   : > { %1536 = vmatprep.mubr.msk.bf16.mxu1 %vm896_vm0, %v1777_v59 }
  0x97   : > { %1042 = vmatmul.mubr.bf16.gmra.mrb[32].mxu0 %v1776_v60 }
  0x98   : > { %1049 = vmatprep.mubr.bf16.mxu0 %v1780_v61 }
  0x9a   : > { %1203 = vmatmul.mubr.bf16.gmra.mrb[32].mxu1 %v1779_v62 }
  0x9b   : > { %1537 = vmatprep.mubr.msk.bf16.mxu1 %vm896_vm0, %v1783_v63 }
  0x9f   : > { %1050 = vmatmul.mubr.bf16.gmra.mrb[36].mxu0 %v1782_v0 }
  0xa0   : > { %1057 = vmatprep.mubr.bf16.mxu0 %v1786_v1 }
  0xa2   : > { %1211 = vmatmul.mubr.bf16.gmra.mrb[36].mxu1 %v1785_v2 }
  0xa3   : > { %1538 = vmatprep.mubr.msk.bf16.mxu1 %vm896_vm0, %v1789_v3 }
  0xa7   : > { %1058 = vmatmul.mubr.bf16.gmra.mrb[40].mxu0 %v1788_v4 }
  0xa8   : > { %1065 = vmatprep.mubr.bf16.mxu0 %v1792_v5 }
  0xaa   : > { %1219 = vmatmul.mubr.bf16.gmra.mrb[40].mxu1 %v1791_v6 }
  0xab   : > { %1539 = vmatprep.mubr.msk.bf16.mxu1 %vm896_vm0, %v1795_v7 }
  0xaf   : > { %1066 = vmatmul.mubr.bf16.gmra.mrb[44].mxu0 %v1794_v8 }
  0xb0   : > { %1073 = vmatprep.mubr.bf16.mxu0 %v1798_v9 }
  0xb2   : > { %1227 = vmatmul.mubr.bf16.gmra.mrb[44].mxu1 %v1797_v10 }
  0xb3   : > { %1540 = vmatprep.mubr.msk.bf16.mxu1 %vm896_vm0, %v1801_v11 }
  0xb7   : > { %1074 = vmatmul.mubr.bf16.gmra.mrb[48].mxu0 %v1800_v12 }
  0xb8   : > { %1081 = vmatprep.mubr.bf16.mxu0 %v1804_v13 }
  0xba   : > { %1235 = vmatmul.mubr.bf16.gmra.mrb[48].mxu1 %v1803_v14 }
  0xbb   : > { %1541 = vmatprep.mubr.msk.bf16.mxu1 %vm896_vm0, %v1807_v15 }
  0xbf   : > { %1082 = vmatmul.mubr.bf16.gmra.mrb[52].mxu0 %v1806_v16 }
  0xc0   : > { %1089 = vmatprep.mubr.bf16.mxu0 %v1810_v17 }
  0xc2   : > { %1243 = vmatmul.mubr.bf16.gmra.mrb[52].mxu1 %v1809_v18 }
  0xc3   : > { %1542 = vmatprep.mubr.msk.bf16.mxu1 %vm896_vm0, %v1813_v19 }
  0xc7   : > { %1090 = vmatmul.mubr.bf16.gmra.mrb[56].mxu0 %v1812_v20 }
  0xc8   : > { %1097 = vmatprep.mubr.bf16.mxu0 %v1816_v21 }
  0xca   : > { %1251 = vmatmul.mubr.bf16.gmra.mrb[56].mxu1 %v1815_v22 }
  0xcb   : > { %1543 = vmatprep.mubr.msk.bf16.mxu1 %vm896_vm0, %v1819_v23 }
  0xcf   : > { %1098 = vmatmul.mubr.bf16.gmra.mrb[60].mxu0 %v1818_v24 }
  0xd2   : > { %1259 = vmatmul.mubr.bf16.gmra.mrb[60].mxu1 %v1821_v25 }
 0x12a   : > { %v1580_v26 = vpop.f32.mrb[0].mxu0 }
 0x12b   : > { %v1581_v27 = vpop.f32.mrb[1].mxu0 }
 0x12c   : > { %v1582_v29 = vadd.f32 %v1581_v27, %v1580_v26  ;;  %v1583_v30 = vpop.f32.mrb[2].mxu0 }
 0x12d   : > { %v1584_v31 = vpop.f32.mrb[3].mxu0  ;;  %v1140_v32 = vpop.f32.mrb[0].mxu1 }
 0x12e   : > { %v1585_v33 = vadd.f32 %v1584_v31, %v1583_v30  ;;  %v980_v34 = vadd.f32 %v1582_v29, %v2205_v28  ;;  %v1142_v35 = vpop.f32.mrb[1].mxu1 }
 0x12f   : > { %v1143_v36 = vpop.f32.mrb[2].mxu1 }
 0x130   : > { %v2208_v37 = vadd.f32 %v1140_v32, %v980_v34  ;;  %v983_v38 = vadd.f32 %v1585_v33, %v2205_v28  ;;  %v1145_v39 = vpop.f32.mrb[3].mxu1 }
 0x132   : > { %v2211_v40 = vadd.f32 %v1143_v36, %v983_v38  ;;  %v1586_v41 = vpop.f32.mrb[4].mxu0  ;;  %v1267_v33 = vmax.f32 %v2208_v37, 0.0 }
 0x133   : > { %v1587_v42 = vpop.f32.mrb[5].mxu0 }
 0x134   : > { %v1588_v43 = vadd.f32 %v1587_v42, %v1586_v41  ;;  %v1589_v44 = vpop.f32.mrb[6].mxu0  ;;  %v1268_v39 = vmax.f32 %v2211_v40, 0.0 }
 0x135   : > { %v1590_v45 = vpop.f32.mrb[7].mxu0  ;;  %v1148_v46 = vpop.f32.mrb[4].mxu1 }
 0x136   : > { %v1591_v47 = vadd.f32 %v1590_v45, %v1589_v44  ;;  %v988_v48 = vadd.f32 %v1588_v43, %v2205_v28  ;;  %v1150_v49 = vpop.f32.mrb[5].mxu1 }
 0x137   : > { %v1151_v50 = vpop.f32.mrb[6].mxu1 }
 0x138   : > { %v2214_v51 = vadd.f32 %v1148_v46, %v988_v48  ;;  %v991_v52 = vadd.f32 %v1591_v47, %v2205_v28  ;;  %v1153_v53 = vpop.f32.mrb[7].mxu1 }
 0x13a   : > { %v2217_v54 = vadd.f32 %v1151_v50, %v991_v52  ;;  %v1592_v55 = vpop.f32.mrb[8].mxu0  ;;  %v1269_v40 = vmax.f32 %v2214_v51, 0.0 }
 0x13b   : > { %v1593_v56 = vpop.f32.mrb[9].mxu0 }
 0x13c   : > { %v1594_v57 = vadd.f32 %v1593_v56, %v1592_v55  ;;  %v1595_v58 = vpop.f32.mrb[10].mxu0 }
 0x13d   : > { %v1596_v59 = vpop.f32.mrb[11].mxu0  ;;  %v1156_v60 = vpop.f32.mrb[8].mxu1 }
 0x13e   : > { %v1597_v61 = vadd.f32 %v1596_v59, %v1595_v58  ;;  %v996_v62 = vadd.f32 %v1594_v57, %v2205_v28  ;;  %v1158_v63 = vpop.f32.mrb[9].mxu1 }
 0x13f   : > { %v1159_v0 = vpop.f32.mrb[10].mxu1 }
 0x140   : > { %v2220_v1 = vadd.f32 %v1156_v60, %v996_v62  ;;  %v999_v2 = vadd.f32 %v1597_v61, %v2205_v28  ;;  %v1161_v3 = vpop.f32.mrb[11].mxu1  ;;  %v1270_v60 = vmax.f32 %v2217_v54, 0.0 }
 0x142   : > { %v2223_v4 = vadd.f32 %v1159_v0, %v999_v2  ;;  %v1598_v5 = vpop.f32.mrb[12].mxu0  ;;  %v1271_v54 = vmax.f32 %v2220_v1, 0.0 }
 0x143   : > { %v1599_v6 = vpop.f32.mrb[13].mxu0 }
 0x144   : > { %v1600_v7 = vadd.f32 %v1599_v6, %v1598_v5  ;;  %v1601_v8 = vpop.f32.mrb[14].mxu0 }
 0x145   : > { %v1602_v9 = vpop.f32.mrb[15].mxu0  ;;  %v1164_v10 = vpop.f32.mrb[12].mxu1 }
 0x146   : > { %v1603_v11 = vadd.f32 %v1602_v9, %v1601_v8  ;;  %v1004_v12 = vadd.f32 %v1600_v7, %v2205_v28  ;;  %v1166_v13 = vpop.f32.mrb[13].mxu1 }
 0x147   : > { %v1167_v14 = vpop.f32.mrb[14].mxu1 }
 0x148   : > { %v2226_v15 = vadd.f32 %v1164_v10, %v1004_v12  ;;  %v1007_v16 = vadd.f32 %v1603_v11, %v2205_v28  ;;  %v1169_v17 = vpop.f32.mrb[15].mxu1 }
 0x149   : > { %v1272_v17 = vmax.f32 %v2223_v4, 0.0 }
 0x14a   : > { %v2229_v18 = vadd.f32 %v1167_v14, %v1007_v16  ;;  %v1604_v19 = vpop.f32.mrb[16].mxu0  ;;  %v1273_v4 = vmax.f32 %v2226_v15, 0.0 }
 0x14b   : > { %v1605_v20 = vpop.f32.mrb[17].mxu0 }
 0x14c   : > { %v1606_v21 = vadd.f32 %v1605_v20, %v1604_v19  ;;  %v1607_v22 = vpop.f32.mrb[18].mxu0 }
 0x14d   : > { %v1608_v23 = vpop.f32.mrb[19].mxu0  ;;  %v1172_v24 = vpop.f32.mrb[16].mxu1 }
 0x14e   : > { %v1609_v25 = vadd.f32 %v1608_v23, %v1607_v22  ;;  %v1012_v26 = vadd.f32 %v1606_v21, %v2205_v28  ;;  %v1174_v27 = vpop.f32.mrb[17].mxu1 }
 0x14f   : > { %v1175_v29 = vpop.f32.mrb[18].mxu1 }
 0x150   : > { %v1173_v30 = vadd.f32 %v1172_v24, %v1012_v26  ;;  %v1015_v31 = vadd.f32 %v1609_v25, %v2205_v28  ;;  %v1177_v32 = vpop.f32.mrb[19].mxu1 }
 0x152   : > { %v1275_v34 = vmax.f32 %v1173_v30, 0.0  ;;  %v1176_v35 = vadd.f32 %v1175_v29, %v1015_v31  ;;  %v1610_v36 = vpop.f32.mrb[20].mxu0 }
 0x153   : > { %v1611_v38 = vpop.f32.mrb[21].mxu0 }
 0x154   : > { %v2235_v41 = vmax.f32 %v1267_v33, %v1275_v34  ;;  %v1276_v42 = vmax.f32 %v1176_v35, 0.0  ;;  %v1612_v43 = vadd.f32 %v1611_v38, %v1610_v36  ;;  %v1613_v44 = vpop.f32.mrb[22].mxu0  ;;  %v1274_v38 = vmax.f32 %v2229_v18, 0.0 }
 0x155   : > { %v1614_v45 = vpop.f32.mrb[23].mxu0  ;;  %v1180_v46 = vpop.f32.mrb[20].mxu1 }
 0x156   : > { %v2237_v47 = vmax.f32 %v1268_v39, %v1276_v42  ;;  %v1615_v48 = vadd.f32 %v1614_v45, %v1613_v44  ;;  %v1020_v49 = vadd.f32 %v1612_v43, %v2205_v28  ;;  %v1182_v50 = vpop.f32.mrb[21].mxu1 }
 0x157   : > { %v1183_v37 = vpop.f32.mrb[22].mxu1 }
 0x158   : > { %v1181_v52 = vadd.f32 %v1180_v46, %v1020_v49  ;;  %v1023_v53 = vadd.f32 %v1615_v48, %v2205_v28  ;;  %v1185_v55 = vpop.f32.mrb[23].mxu1 }
 0x15a   : > { %v1277_v56 = vmax.f32 %v1181_v52, 0.0  ;;  %v1184_v57 = vadd.f32 %v1183_v37, %v1023_v53  ;;  %v1616_v58 = vpop.f32.mrb[24].mxu0 }
 0x15b   : > { %v1617_v59 = vpop.f32.mrb[25].mxu0 }
 0x15c   : > { %v2243_v61 = vmax.f32 %v1269_v40, %v1277_v56  ;;  %v1278_v62 = vmax.f32 %v1184_v57, 0.0  ;;  %v1618_v63 = vadd.f32 %v1617_v59, %v1616_v58  ;;  %v1619_v0 = vpop.f32.mrb[26].mxu0 }
 0x15d   : > { %v1620_v2 = vpop.f32.mrb[27].mxu0  ;;  %v1188_v3 = vpop.f32.mrb[24].mxu1 }
 0x15e   : > { %v2245_v5 = vmax.f32 %v1270_v60, %v1278_v62  ;;  %v1621_v6 = vadd.f32 %v1620_v2, %v1619_v0  ;;  %v1028_v7 = vadd.f32 %v1618_v63, %v2205_v28  ;;  %v1190_v8 = vpop.f32.mrb[25].mxu1 }
 0x15f   : > { %v1191_v51 = vpop.f32.mrb[26].mxu1 }
 0x160   : > { %v1189_v9 = vadd.f32 %v1188_v3, %v1028_v7  ;;  %v1031_v10 = vadd.f32 %v1621_v6, %v2205_v28  ;;  %v1193_v11 = vpop.f32.mrb[27].mxu1 }
 0x162   : > { %v1279_v12 = vmax.f32 %v1189_v9, 0.0  ;;  %v1192_v13 = vadd.f32 %v1191_v51, %v1031_v10  ;;  %v1622_v14 = vpop.f32.mrb[28].mxu0 }
 0x163   : > { %v1623_v16 = vpop.f32.mrb[29].mxu0 }
 0x164   : > { %v2251_v19 = vmax.f32 %v1271_v54, %v1279_v12  ;;  %v1280_v20 = vmax.f32 %v1192_v13, 0.0  ;;  %v1624_v21 = vadd.f32 %v1623_v16, %v1622_v14  ;;  %v1625_v22 = vpop.f32.mrb[30].mxu0 }
 0x165   : > { %v1626_v23 = vpop.f32.mrb[31].mxu0  ;;  %v1196_v24 = vpop.f32.mrb[28].mxu1 }
 0x166   : > { %v2253_v25 = vmax.f32 %v1272_v17, %v1280_v20  ;;  %v1627_v26 = vadd.f32 %v1626_v23, %v1625_v22  ;;  %v1036_v27 = vadd.f32 %v1624_v21, %v2205_v28  ;;  %v1198_v29 = vpop.f32.mrb[29].mxu1 }
 0x167   : > { %v1199_v1 = vpop.f32.mrb[30].mxu1 }
 0x168   : > { %v1197_v30 = vadd.f32 %v1196_v24, %v1036_v27  ;;  %v1039_v31 = vadd.f32 %v1627_v26, %v2205_v28  ;;  %v1201_v32 = vpop.f32.mrb[31].mxu1 }
 0x16a   : > { %v1281_v33 = vmax.f32 %v1197_v30, 0.0  ;;  %v1200_v34 = vadd.f32 %v1199_v1, %v1039_v31  ;;  %v1628_v35 = vpop.f32.mrb[32].mxu0 }
 0x16b   : > { %v1629_v36 = vpop.f32.mrb[33].mxu0 }
 0x16c   : > { %v2259_v39 = vmax.f32 %v1273_v4, %v1281_v33  ;;  %v1282_v42 = vmax.f32 %v1200_v34, 0.0  ;;  %v1630_v43 = vadd.f32 %v1629_v36, %v1628_v35  ;;  %v1631_v44 = vpop.f32.mrb[34].mxu0 }
 0x16d   : > { %v1632_v45 = vpop.f32.mrb[35].mxu0  ;;  %v1204_v46 = vpop.f32.mrb[32].mxu1 }
 0x16e   : > { %v2261_v48 = vmax.f32 %v1274_v38, %v1282_v42  ;;  %v1633_v49 = vadd.f32 %v1632_v45, %v1631_v44  ;;  %v1044_v50 = vadd.f32 %v1630_v43, %v2205_v28  ;;  %v1206_v37 = vpop.f32.mrb[33].mxu1 }
 0x16f   : > { %v1207_v15 = vpop.f32.mrb[34].mxu1 }
 0x170   : > { %v2264_v52 = vadd.f32 %v1204_v46, %v1044_v50  ;;  %v1047_v53 = vadd.f32 %v1633_v49, %v2205_v28  ;;  %v1209_v55 = vpop.f32.mrb[35].mxu1 }
 0x172   : > { %v2267_v18 = vadd.f32 %v1207_v15, %v1047_v53  ;;  %v1634_v40 = vpop.f32.mrb[36].mxu0 }
 0x173   : > { %v1635_v56 = vpop.f32.mrb[37].mxu0 }
 0x174   : > { %v1636_v57 = vadd.f32 %v1635_v56, %v1634_v40  ;;  %v1637_v58 = vpop.f32.mrb[38].mxu0 }
 0x175   : > { %v1638_v59 = vpop.f32.mrb[39].mxu0  ;;  %v1212_v60 = vpop.f32.mrb[36].mxu1 }
 0x176   : > { %v1639_v62 = vadd.f32 %v1638_v59, %v1637_v58  ;;  %v1052_v63 = vadd.f32 %v1636_v57, %v2205_v28  ;;  %v1214_v0 = vpop.f32.mrb[37].mxu1  ;;  %v1283_v57 = vmax.f32 %v2264_v52, 0.0 }
 0x177   : > { %v1215_v2 = vpop.f32.mrb[38].mxu1 }
 0x178   : > { %v2270_v3 = vadd.f32 %v1212_v60, %v1052_v63  ;;  %v1055_v6 = vadd.f32 %v1639_v62, %v2205_v28  ;;  %v1217_v7 = vpop.f32.mrb[39].mxu1  ;;  %v1284_v63 = vmax.f32 %v2267_v18, 0.0 }
 0x17a   : > { %v2273_v8 = vadd.f32 %v1215_v2, %v1055_v6  ;;  %v1640_v51 = vpop.f32.mrb[40].mxu0 }
 0x17b   : > { %v1641_v9 = vpop.f32.mrb[41].mxu0 }
 0x17c   : > { %v1642_v10 = vadd.f32 %v1641_v9, %v1640_v51  ;;  %v1643_v11 = vpop.f32.mrb[42].mxu0 }
 0x17d   : > { %v1644_v54 = vpop.f32.mrb[43].mxu0  ;;  %v1220_v12 = vpop.f32.mrb[40].mxu1 }
 0x17e   : > { %v1645_v13 = vadd.f32 %v1644_v54, %v1643_v11  ;;  %v1060_v14 = vadd.f32 %v1642_v10, %v2205_v28  ;;  %v1222_v16 = vpop.f32.mrb[41].mxu1 }
 0x17f   : > { %v1223_v17 = vpop.f32.mrb[42].mxu1 }
 0x180   : > { %v2276_v20 = vadd.f32 %v1220_v12, %v1060_v14  ;;  %v1063_v21 = vadd.f32 %v1645_v13, %v2205_v28  ;;  %v1225_v22 = vpop.f32.mrb[43].mxu1 }
 0x182   : > { %v2279_v23 = vadd.f32 %v1223_v17, %v1063_v21  ;;  %v1646_v24 = vpop.f32.mrb[44].mxu0  ;;  %v1285_v21 = vmax.f32 %v2270_v3, 0.0 }
 0x183   : > { %v1647_v26 = vpop.f32.mrb[45].mxu0 }
 0x184   : > { %v1648_v27 = vadd.f32 %v1647_v26, %v1646_v24  ;;  %v1649_v29 = vpop.f32.mrb[46].mxu0 }
 0x185   : > { %v1650_v1 = vpop.f32.mrb[47].mxu0  ;;  %v1228_v30 = vpop.f32.mrb[44].mxu1 }
 0x186   : > { %v1651_v31 = vadd.f32 %v1650_v1, %v1649_v29  ;;  %v1068_v32 = vadd.f32 %v1648_v27, %v2205_v28  ;;  %v1230_v4 = vpop.f32.mrb[45].mxu1  ;;  %v1286_v1 = vmax.f32 %v2273_v8, 0.0 }
 0x187   : > { %v1231_v33 = vpop.f32.mrb[46].mxu1 }
 0x188   : > { %v2282_v34 = vadd.f32 %v1228_v30, %v1068_v32  ;;  %v1071_v35 = vadd.f32 %v1651_v31, %v2205_v28  ;;  %v1233_v36 = vpop.f32.mrb[47].mxu1 }
 0x18a   : > { %v2287_v38 = vadd.f32 %v1231_v33, %v1071_v35  ;;  %v1652_v42 = vpop.f32.mrb[48].mxu0 }
 0x18b   : > { %v1653_v43 = vpop.f32.mrb[49].mxu0 }
 0x18c   : > { %v1654_v44 = vadd.f32 %v1653_v43, %v1652_v42  ;;  %v1655_v45 = vpop.f32.mrb[50].mxu0 }
 0x18d   : > { %v1656_v46 = vpop.f32.mrb[51].mxu0  ;;  %v1236_v49 = vpop.f32.mrb[48].mxu1 }
 0x18e   : > { %v1657_v50 = vadd.f32 %v1656_v46, %v1655_v45  ;;  %v1076_v37 = vadd.f32 %v1654_v44, %v2205_v28  ;;  %v1238_v15 = vpop.f32.mrb[49].mxu1 }
 0x18f   : > { %v1239_v53 = vpop.f32.mrb[50].mxu1 }
 0x190   : > { %v1237_v55 = vadd.f32 %v1236_v49, %v1076_v37  ;;  %v1079_v40 = vadd.f32 %v1657_v50, %v2205_v28  ;;  %v1241_v56 = vpop.f32.mrb[51].mxu1  ;;  %v1287_v37 = vmax.f32 %v2276_v20, 0.0 }
 0x191   : > { %v1288_v56 = vmax.f32 %v2279_v23, 0.0 }
 0x192   : > { %v1291_v58 = vmax.f32 %v1237_v55, 0.0  ;;  %v1240_v59 = vadd.f32 %v1239_v53, %v1079_v40  ;;  %v1658_v60 = vpop.f32.mrb[52].mxu0 }
 0x193   : > { %v1659_v62 = vpop.f32.mrb[53].mxu0 }
 0x194   : > { %v1307_v0 = vmax.f32 %v1283_v57, %v1291_v58  ;;  %v1292_v2 = vmax.f32 %v1240_v59, 0.0  ;;  %v1660_v6 = vadd.f32 %v1659_v62, %v1658_v60  ;;  %v1661_v7 = vpop.f32.mrb[54].mxu0 }
 0x195   : > { %v1662_v51 = vpop.f32.mrb[55].mxu0  ;;  %v1244_v9 = vpop.f32.mrb[52].mxu1 }
 0x196   : > { %v1315_v10 = vmax.f32 %v2235_v41, %v1307_v0  ;;  %v1308_v11 = vmax.f32 %v1284_v63, %v1292_v2  ;;  %v1663_v54 = vadd.f32 %v1662_v51, %v1661_v7  ;;  %v1084_v12 = vadd.f32 %v1660_v6, %v2205_v28  ;;  %v1246_v52 = vpop.f32.mrb[53].mxu1 }
 0x197   : > { %v1247_v18 = vpop.f32.mrb[54].mxu1 }
 0x198   : > { %v1556_v13 = vpack.c.bf16 %v1315_v10, %v1315_v10  ;;  %v1316_v14 = vmax.f32 %v2237_v47, %v1308_v11  ;;  %v1245_v16 = vadd.f32 %v1244_v9, %v1084_v12  ;;  %v1087_v41 = vadd.f32 %v1663_v54, %v2205_v28  ;;  %v1249_v17 = vpop.f32.mrb[55].mxu1 }
 0x199   : > { %v1289_v54 = vmax.f32 %v2282_v34, 0.0 }
 0x19a   : > { %1356 = vst.msk [vmem:[%s2298_s20] sm:$0xf] %vm1355_vm1, %v1556_v13  ;;  %v1557_v22 = vpack.c.bf16 %v1316_v14, %v1316_v14  ;;  %v1293_v24 = vmax.f32 %v1245_v16, 0.0  ;;  %v1248_v26 = vadd.f32 %v1247_v18, %v1087_v41  ;;  %v1664_v27 = vpop.f32.mrb[56].mxu0  ;;  %v1290_v18 = vmax.f32 %v2287_v38, 0.0 }
 0x19b   : > { %v1665_v29 = vpop.f32.mrb[57].mxu0 }
 0x19c   : > { %1357 = vst.msk [vmem:[%s2298_s20 + $0x4] sm:$0xf] %vm1355_vm1, %v1557_v22  ;;  %v1309_v30 = vmax.f32 %v1285_v21, %v1293_v24  ;;  %v1294_v31 = vmax.f32 %v1248_v26, 0.0  ;;  %v1666_v47 = vadd.f32 %v1665_v29, %v1664_v27  ;;  %v1667_v32 = vpop.f32.mrb[58].mxu0 }
 0x19d   : > { %v1668_v4 = vpop.f32.mrb[59].mxu0  ;;  %v1252_v33 = vpop.f32.mrb[56].mxu1 }
 0x19e   : > { %v1317_v3 = vmax.f32 %v2243_v61, %v1309_v30  ;;  %v1310_v35 = vmax.f32 %v1286_v1, %v1294_v31  ;;  %v1669_v36 = vadd.f32 %v1668_v4, %v1667_v32  ;;  %v1092_v42 = vadd.f32 %v1666_v47, %v2205_v28  ;;  %v1254_v43 = vpop.f32.mrb[57].mxu1 }
 0x19f   : > { %v1255_v44 = vpop.f32.mrb[58].mxu1 }
 0x1a0   : > { %v1558_v45 = vpack.c.bf16 %v1317_v3, %v1317_v3  ;;  %v1318_v8 = vmax.f32 %v2245_v5, %v1310_v35  ;;  %v1253_v46 = vadd.f32 %v1252_v33, %v1092_v42  ;;  %v1095_v49 = vadd.f32 %v1669_v36, %v2205_v28  ;;  %v1257_v50 = vpop.f32.mrb[59].mxu1 }
 0x1a2   : > { %1358 = vst.msk [vmem:[%s2298_s20 + $0x8] sm:$0xf] %vm1355_vm1, %v1558_v45  ;;  %v1559_v15 = vpack.c.bf16 %v1318_v8, %v1318_v8  ;;  %v1295_v61 = vmax.f32 %v1253_v46, 0.0  ;;  %v1256_v53 = vadd.f32 %v1255_v44, %v1095_v49  ;;  %v1670_v55 = vpop.f32.mrb[60].mxu0 }
 0x1a3   : > { %v1671_v40 = vpop.f32.mrb[61].mxu0 }
 0x1a4   : > { %1359 = vst.msk [vmem:[%s2298_s20 + $0xc] sm:$0xf] %vm1355_vm1, %v1559_v15  ;;  %v1311_v57 = vmax.f32 %v1287_v37, %v1295_v61  ;;  %v1296_v58 = vmax.f32 %v1256_v53, 0.0  ;;  %v1672_v5 = vadd.f32 %v1671_v40, %v1670_v55  ;;  %v1673_v59 = vpop.f32.mrb[62].mxu0 }
 0x1a5   : > { %v1674_v60 = vpop.f32.mrb[63].mxu0  ;;  %v1260_v62 = vpop.f32.mrb[60].mxu1 }
 0x1a6   : > { %v1319_v20 = vmax.f32 %v2251_v19, %v1311_v57  ;;  %v1312_v63 = vmax.f32 %v1288_v56, %v1296_v58  ;;  %v1675_v0 = vadd.f32 %v1674_v60, %v1673_v59  ;;  %v1100_v2 = vadd.f32 %v1672_v5, %v2205_v28  ;;  %v1262_v6 = vpop.f32.mrb[61].mxu1 }
 0x1a7   : > { %v1263_v7 = vpop.f32.mrb[62].mxu1 }
 0x1a8   : > { %v1560_v51 = vpack.c.bf16 %v1319_v20, %v1319_v20  ;;  %v1320_v23 = vmax.f32 %v2253_v25, %v1312_v63  ;;  %v1261_v9 = vadd.f32 %v1260_v62, %v1100_v2  ;;  %v1103_v10 = vadd.f32 %v1675_v0, %v2205_v28  ;;  %v1265_v11 = vpop.f32.mrb[63].mxu1 }
 0x1aa   : > { %1360 = vst.msk [vmem:[%s2298_s20 + $0x10] sm:$0xf] %vm1355_vm1, %v1560_v51  ;;  %v1561_v19 = vpack.c.bf16 %v1320_v23, %v1320_v23  ;;  %v1297_v12 = vmax.f32 %v1261_v9, 0.0  ;;  %v1264_v52 = vadd.f32 %v1263_v7, %v1103_v10 }
 0x1ac   : > { %1361 = vst.msk [vmem:[%s2298_s20 + $0x14] sm:$0xf] %vm1355_vm1, %v1561_v19  ;;  %v1313_v13 = vmax.f32 %v1289_v54, %v1297_v12  ;;  %v1298_v14 = vmax.f32 %v1264_v52, 0.0 }
 0x1ae   : > { %v1321_v25 = vmax.f32 %v2259_v39, %v1313_v13  ;;  %v1314_v16 = vmax.f32 %v1290_v18, %v1298_v14 }
 0x1b0   : > { %v1562_v41 = vpack.c.bf16 %v1321_v25, %v1321_v25  ;;  %v1322_v28 = vmax.f32 %v2261_v48, %v1314_v16 }
 0x1b2   : > { %1362 = vst.msk [vmem:[%s2298_s20 + $0x18] sm:$0xf] %vm1355_vm1, %v1562_v41  ;;  %v1563_v34 = vpack.c.bf16 %v1322_v28, %v1322_v28 }
 0x1b4   : > { %1363 = vst.msk [vmem:[%s2298_s20 + $0x1c] sm:$0xf] %vm1355_vm1, %v1563_v34 }
 0x1b5 PF: > { %p10_p9 = scmp.ge.s32.totalorder %s1884_s16, 4   ;;  %s2348_s12 = smov %s1840_s13 }
 0x1b6   : > { %s2349_s13 = smov %s1893_s19  ;;  %s2350_s14 = smov %s1884_s16 }
 0x1b7   :  { %12 = sbr.rel (!%p10_p9) target bundleno = 2 (0x2), region = 90 }

// kernel: fashion_mnist_cnn_forward.5
= control target key start
LH: loop header
LB: loop body
LE: loop exit
PB: predicated region body
PF: predicated region fallthrough
CT: control target
= control target key end

     0   :  { %vm1558_vm0 = vmmov 0   ;;  %vm885_vm1 = vcmask 261120   ;;  %s1921_s1 = inlined_call_operand.vmem [shape: bf16[1568,128], index: 1, kind: input, shape index: {}]   ;;  %s1922_s0 = inlined_call_operand.vmem [shape: bf16[16,1568], index: 0, kind: input, shape index: {}]   ;;  %s1923_s2 = inlined_call_operand.vmem [shape: f32[1,128], index: 2, kind: input, shape index: {}]   ;;  %s1924_s3 = inlined_call_operand.vmem [shape: f32[16,128], index: 3, kind: output, shape index: {}]  }
   0x1   :  { %v1440_v0 = vld [vmem:[%s1921_s1 + $0x40] sm:$0xff]   ;;  %v1444_v4 = vld [vmem:[%s1921_s1 + $0x48] sm:$0xff]   ;;  %v1448_v8 = vld [vmem:[%s1921_s1 + $0x50] sm:$0xff]  }
   0x2   :  { %v1441_v1 = vld [vmem:[%s1921_s1] sm:$0xff]   ;;  %1295 = vmatprep.subr.bf16.mxu0 %v1440_v0  ;;  %v1445_v5 = vld [vmem:[%s1921_s1 + $0x8] sm:$0xff]   ;;  %v1449_v9 = vld [vmem:[%s1921_s1 + $0x10] sm:$0xff]  }
   0x3   :  { %v1442_v2 = vld [vmem:[%s1921_s1 + $0xc0] sm:$0xff]   ;;  %1296 = vmatpush3.bf16.msra.mxu0 %v1441_v1  ;;  %v1446_v6 = vld [vmem:[%s1921_s1 + $0xc8] sm:$0xff]   ;;  %v1450_v10 = vld [vmem:[%s1921_s1 + $0xd0] sm:$0xff]  }
   0x4   :  { %v1443_v3 = vld [vmem:[%s1921_s1 + $0x80] sm:$0xff]   ;;  %1317 = vmatprep.subr.bf16.mxu1 %v1442_v2  ;;  %1297 = vmatprep.subr.bf16.mxu0 %v1444_v4  ;;  %v1447_v7 = vld [vmem:[%s1921_s1 + $0x88] sm:$0xff]   ;;  %v1451_v11 = vld [vmem:[%s1921_s1 + $0x90] sm:$0xff]  }
   0x5   :  { %1318 = vmatpush3.bf16.msra.mxu1 %v1443_v3  ;;  %v1452_v12 = vld [vmem:[%s1921_s1 + $0x58] sm:$0xff]   ;;  %v1456_v16 = vld [vmem:[%s1921_s1 + $0x60] sm:$0xff]   ;;  %v1460_v20 = vld [vmem:[%s1921_s1 + $0x68] sm:$0xff]  }
   0x6   :  { %1319 = vmatprep.subr.bf16.mxu1 %v1446_v6  ;;  %v1453_v13 = vld [vmem:[%s1921_s1 + $0x18] sm:$0xff]   ;;  %v1457_v17 = vld [vmem:[%s1921_s1 + $0x20] sm:$0xff]   ;;  %v1461_v21 = vld [vmem:[%s1921_s1 + $0x28] sm:$0xff]  }
   0x7   :  { %1298 = vmatpush3.bf16.msra.mxu0 %v1445_v5  ;;  %v1454_v14 = vld [vmem:[%s1921_s1 + $0xd8] sm:$0xff]   ;;  %v1458_v18 = vld [vmem:[%s1921_s1 + $0xe0] sm:$0xff]   ;;  %v1462_v22 = vld [vmem:[%s1921_s1 + $0xe8] sm:$0xff]  }
   0x8   :  { %1299 = vmatprep.subr.bf16.mxu0 %v1448_v8  ;;  %v1455_v15 = vld [vmem:[%s1921_s1 + $0x98] sm:$0xff]   ;;  %v1459_v19 = vld [vmem:[%s1921_s1 + $0xa0] sm:$0xff]   ;;  %v1463_v23 = vld [vmem:[%s1921_s1 + $0xa8] sm:$0xff]  }
   0x9   :  { %1320 = vmatpush3.bf16.msra.mxu1 %v1447_v7  ;;  %v1464_v24 = vld [vmem:[%s1921_s1 + $0x70] sm:$0xff]   ;;  %v1468_v28 = vld [vmem:[%s1921_s1 + $0x78] sm:$0xff]   ;;  %v1475_v34 = vld [vmem:[%s1921_s1 + $0x140] sm:$0xff]  }
   0xa   :  { %1321 = vmatprep.subr.bf16.mxu1 %v1450_v10  ;;  %v1465_v25 = vld [vmem:[%s1921_s1 + $0x30] sm:$0xff]   ;;  %v1469_v29 = vld [vmem:[%s1921_s1 + $0x38] sm:$0xff]   ;;  %v1478_v36 = vld [vmem:[%s1922_s0 + $0xc] ss:$52 sps:$4 sm:$0xff]  }
   0xb   :  { %1300 = vmatpush3.bf16.msra.mxu0 %v1449_v9  ;;  %v1466_v26 = vld [vmem:[%s1921_s1 + $0xf0] sm:$0xff]   ;;  %v1470_v30 = vld [vmem:[%s1921_s1 + $0xf8] sm:$0xff]   ;;  %v1479_v37 = vld [vmem:[%s1921_s1 + $0x100] sm:$0xff]   ;;  %962 = vmatprep.mubr.bf16.mxu1 %v1478_v36 }
   0xc   :  { %1301 = vmatprep.subr.bf16.mxu0 %v1452_v12  ;;  %v1467_v27 = vld [vmem:[%s1921_s1 + $0xb0] sm:$0xff]   ;;  %v1471_v31 = vld [vmem:[%s1921_s1 + $0xb8] sm:$0xff]   ;;  %v1480_v38 = vld [vmem:[%s1921_s1 + $0x1c0] sm:$0xff]  }
   0xd   :  { %1322 = vmatpush3.bf16.msra.mxu1 %v1451_v11  ;;  %v1472_v32 = vld [vmem:[%s1922_s0] ss:$52 sps:$4 sm:$0xff]   ;;  %v1474_v33 = vld [vmem:[%s1922_s0 + $0x4] ss:$52 sps:$4 sm:$0xff]   ;;  %v1476_v35 = vld [vmem:[%s1922_s0 + $0x8] ss:$52 sps:$4 sm:$0xff]  }
   0xe   :  { %1323 = vmatprep.subr.bf16.mxu1 %v1454_v14  ;;  %921 = vmatprep.mubr.bf16.mxu0 %v1474_v33  ;;  %v1481_v39 = vld [vmem:[%s1921_s1 + $0x180] sm:$0xff]   ;;  %v1482_v40 = vld [vmem:[%s1921_s1 + $0x148] sm:$0xff]   ;;  %v1486_v44 = vld [vmem:[%s1921_s1 + $0x150] sm:$0xff]  }
   0xf   :  { %1302 = vmatpush3.bf16.msra.mxu0 %v1453_v13  ;;  %v1483_v41 = vld [vmem:[%s1921_s1 + $0x108] sm:$0xff]   ;;  %v1487_v45 = vld [vmem:[%s1921_s1 + $0x110] sm:$0xff]   ;;  %v1490_v48 = vld [vmem:[%s1921_s1 + $0x158] sm:$0xff]  }
  0x10   :  { %1303 = vmatprep.subr.bf16.mxu0 %v1456_v16  ;;  %v1484_v42 = vld [vmem:[%s1921_s1 + $0x1c8] sm:$0xff]   ;;  %v1488_v46 = vld [vmem:[%s1921_s1 + $0x1d0] sm:$0xff]   ;;  %v1491_v49 = vld [vmem:[%s1921_s1 + $0x118] sm:$0xff]  }
  0x11   :  { %1324 = vmatpush3.bf16.msra.mxu1 %v1455_v15  ;;  %v1485_v43 = vld [vmem:[%s1921_s1 + $0x188] sm:$0xff]   ;;  %v1489_v47 = vld [vmem:[%s1921_s1 + $0x190] sm:$0xff]   ;;  %v1492_v50 = vld [vmem:[%s1921_s1 + $0x1d8] sm:$0xff]  }
  0x12   :  { %1325 = vmatprep.subr.bf16.mxu1 %v1458_v18  ;;  %v1493_v51 = vld [vmem:[%s1921_s1 + $0x198] sm:$0xff]   ;;  %v1494_v52 = vld [vmem:[%s1921_s1 + $0x160] sm:$0xff]   ;;  %v1498_v56 = vld [vmem:[%s1921_s1 + $0x168] sm:$0xff]  }
  0x13   :  { %1304 = vmatpush3.bf16.msra.mxu0 %v1457_v17  ;;  %v1495_v53 = vld [vmem:[%s1921_s1 + $0x120] sm:$0xff]   ;;  %v1499_v57 = vld [vmem:[%s1921_s1 + $0x128] sm:$0xff]   ;;  %v1502_v60 = vld [vmem:[%s1921_s1 + $0x170] sm:$0xff]  }
  0x14   :  { %1305 = vmatprep.subr.bf16.mxu0 %v1460_v20  ;;  %v1496_v54 = vld [vmem:[%s1921_s1 + $0x1e0] sm:$0xff]   ;;  %v1500_v58 = vld [vmem:[%s1921_s1 + $0x1e8] sm:$0xff]   ;;  %v1503_v61 = vld [vmem:[%s1921_s1 + $0x130] sm:$0xff]  }
  0x15   :  { %1326 = vmatpush3.bf16.msra.mxu1 %v1459_v19  ;;  %v1497_v55 = vld [vmem:[%s1921_s1 + $0x1a0] sm:$0xff]   ;;  %v1501_v59 = vld [vmem:[%s1921_s1 + $0x1a8] sm:$0xff]   ;;  %v1504_v62 = vld [vmem:[%s1921_s1 + $0x1f0] sm:$0xff]  }
  0x16   :  { %1327 = vmatprep.subr.bf16.mxu1 %v1462_v22  ;;  %v1505_v63 = vld [vmem:[%s1921_s1 + $0x1b0] sm:$0xff]   ;;  %v1506_v0 = vld [vmem:[%s1921_s1 + $0x178] sm:$0xff]   ;;  %v1513_v6 = vld [vmem:[%s1921_s1 + $0x240] sm:$0xff]  }
  0x17   :  { %1306 = vmatpush3.bf16.msra.mxu0 %v1461_v21  ;;  %v1507_v1 = vld [vmem:[%s1921_s1 + $0x138] sm:$0xff]   ;;  %v1510_v4 = vld [vmem:[%s1922_s0 + $0x10] ss:$52 sps:$4 sm:$0xff]   ;;  %v1512_v5 = vld [vmem:[%s1922_s0 + $0x14] ss:$52 sps:$4 sm:$0xff]  }
  0x18   :  { %1307 = vmatprep.subr.bf16.mxu0 %v1464_v24  ;;  %v1508_v2 = vld [vmem:[%s1921_s1 + $0x1f8] sm:$0xff]   ;;  %v1517_v9 = vld [vmem:[%s1921_s1 + $0x200] sm:$0xff]   ;;  %v1520_v12 = vld [vmem:[%s1921_s1 + $0x248] sm:$0xff]  }
  0x19   :  { %1328 = vmatpush3.bf16.msra.mxu1 %v1463_v23  ;;  %v1509_v3 = vld [vmem:[%s1921_s1 + $0x1b8] sm:$0xff]   ;;  %v1518_v10 = vld [vmem:[%s1921_s1 + $0x2c0] sm:$0xff]   ;;  %v1521_v13 = vld [vmem:[%s1921_s1 + $0x208] sm:$0xff]  }
  0x1a   :  { %1329 = vmatprep.subr.bf16.mxu1 %v1466_v26  ;;  %v1514_v7 = vld [vmem:[%s1922_s0 + $0x18] ss:$52 sps:$4 sm:$0xff]   ;;  %v1516_v8 = vld [vmem:[%s1922_s0 + $0x1c] ss:$52 sps:$4 sm:$0xff]   ;;  %v1519_v11 = vld [vmem:[%s1921_s1 + $0x280] sm:$0xff]  }
  0x1b   :  { %1308 = vmatpush3.bf16.msra.mxu0 %v1465_v25  ;;  %v1522_v14 = vld [vmem:[%s1921_s1 + $0x2c8] sm:$0xff]   ;;  %v1524_v16 = vld [vmem:[%s1921_s1 + $0x250] sm:$0xff]   ;;  %v1528_v20 = vld [vmem:[%s1921_s1 + $0x258] sm:$0xff]  }
  0x1c   :  { %1309 = vmatprep.subr.bf16.mxu0 %v1468_v28  ;;  %v1523_v15 = vld [vmem:[%s1921_s1 + $0x288] sm:$0xff]   ;;  %v1525_v17 = vld [vmem:[%s1921_s1 + $0x210] sm:$0xff]   ;;  %v1529_v21 = vld [vmem:[%s1921_s1 + $0x218] sm:$0xff]  }
  0x1d   :  { %1330 = vmatpush3.bf16.msra.mxu1 %v1467_v27  ;;  %v1526_v18 = vld [vmem:[%s1921_s1 + $0x2d0] sm:$0xff]   ;;  %v1530_v22 = vld [vmem:[%s1921_s1 + $0x2d8] sm:$0xff]   ;;  %v1532_v24 = vld [vmem:[%s1921_s1 + $0x260] sm:$0xff]  }
  0x1e   :  { %1331 = vmatprep.subr.bf16.mxu1 %v1470_v30  ;;  %v1527_v19 = vld [vmem:[%s1921_s1 + $0x290] sm:$0xff]   ;;  %v1531_v23 = vld [vmem:[%s1921_s1 + $0x298] sm:$0xff]   ;;  %v1533_v25 = vld [vmem:[%s1921_s1 + $0x220] sm:$0xff]  }
  0x1f   :  { %1310 = vmatpush3.bf16.msra.mxu0 %v1469_v29  ;;  %v1534_v26 = vld [vmem:[%s1921_s1 + $0x2e0] sm:$0xff]   ;;  %v1536_v28 = vld [vmem:[%s1921_s1 + $0x268] sm:$0xff]   ;;  %v1541_v33 = vld [vmem:[%s1921_s1 + $0x230] sm:$0xff]  }
  0x20   :  { %1339 = vmatprep.subr.bf16.mxu0 %v1475_v34  ;;  %v1535_v27 = vld [vmem:[%s1921_s1 + $0x2a0] sm:$0xff]   ;;  %v1537_v29 = vld [vmem:[%s1921_s1 + $0x228] sm:$0xff]   ;;  %v1542_v34 = vld [vmem:[%s1921_s1 + $0x2f0] sm:$0xff]  }
  0x21   :  { %1332 = vmatpush3.bf16.msra.mxu1 %v1471_v31  ;;  %v1538_v30 = vld [vmem:[%s1921_s1 + $0x2e8] sm:$0xff]   ;;  %v1544_v36 = vld [vmem:[%s1921_s1 + $0x278] sm:$0xff]  }
  0x22   :  { %922 = vmatmul.mubr.bf16.vlgmr.msra.gmra.mrb[0].mxu0 %v1472_v32  ;;  %1361 = vmatprep.subr.bf16.mxu1 %v1480_v38  ;;  %v1539_v31 = vld [vmem:[%s1921_s1 + $0x2a8] sm:$0xff]   ;;  %v1540_v32 = vld [vmem:[%s1921_s1 + $0x270] sm:$0xff]   ;;  %v1546_v38 = vld [vmem:[%s1921_s1 + $0x2f8] sm:$0xff]  }
  0x23   :  { %1340 = vmatpush3.bf16.msra.mxu0 %v1479_v37  ;;  %1003 = vmatprep.mubr.bf16.mxu0 %v1512_v5  ;;  %v1545_v37 = vld [vmem:[%s1921_s1 + $0x238] sm:$0xff]  }
  0x24   :  { %963 = vmatmul.mubr.bf16.vlgmr.msra.gmra.mrb[0].mxu1 %v1476_v35  ;;  %1341 = vmatprep.subr.bf16.mxu0 %v1482_v40  ;;  %v1543_v35 = vld [vmem:[%s1921_s1 + $0x2b0] sm:$0xff]  }
  0x25   :  { %1362 = vmatpush3.bf16.msra.mxu1 %v1481_v39  ;;  %1044 = vmatprep.mubr.bf16.mxu1 %v1516_v8  ;;  %v1547_v39 = vld [vmem:[%s1921_s1 + $0x2b8] sm:$0xff]   ;;  %v1548_v40 = vld [vmem:[%s1922_s0 + $0x20] ss:$52 sps:$4 sm:$0xff]  }
  0x26   :  { %1363 = vmatprep.subr.bf16.mxu1 %v1484_v42  ;;  %v1557_v42 = vmov 0.0  }
  0x27   :  { %1342 = vmatpush3.bf16.msra.mxu0 %v1483_v41  ;;  %v1550_v41 = vld [vmem:[%s1922_s0 + $0x24] ss:$52 sps:$4 sm:$0xff]  }
  0x28   :  { %1343 = vmatprep.subr.bf16.mxu0 %v1486_v44  ;;  %v1553_v44 = vld [vmem:[%s1922_s0 + $0x2c] ss:$52 sps:$4 sm:$0xff]  }
  0x29   :  { %1364 = vmatpush3.bf16.msra.mxu1 %v1485_v43  ;;  %v1551_v43 = vld [vmem:[%s1922_s0 + $0x28] ss:$52 sps:$4 sm:$0xff]  }
  0x2a   :  { %1365 = vmatprep.subr.bf16.mxu1 %v1488_v46  ;;  %v1555_v46 = vld [vmem:[%s1921_s1 + $0x308] sm:$0xff]  }
  0x2b   :  { %1344 = vmatpush3.bf16.msra.mxu0 %v1487_v45  ;;  %v1554_v45 = vld [vmem:[%s1921_s1 + $0x300] sm:$0xff]  }
  0x2c   :  { %1345 = vmatprep.subr.bf16.mxu0 %v1490_v48 }
  0x2d   :  { %1366 = vmatpush3.bf16.msra.mxu1 %v1489_v47  ;;  %v1556_v47 = vld [vmem:[%s1922_s0 + $0x30] ss:$52 sps:$4 sm:$0xff]  }
  0x2e   :  { %1367 = vmatprep.subr.bf16.mxu1 %v1492_v50 }
  0x2f   :  { %1346 = vmatpush3.bf16.msra.mxu0 %v1491_v49  ;;  %v1182_v49 = vld [vmem:[%s1923_s2] ss:$0 sm:$0xff] }
  0x30   :  { %1347 = vmatprep.subr.bf16.mxu0 %v1494_v52 }
  0x31   :  { %1368 = vmatpush3.bf16.msra.mxu1 %v1493_v51 }
  0x32   :  { %1369 = vmatprep.subr.bf16.mxu1 %v1496_v54 }
  0x33   :  { %1348 = vmatpush3.bf16.msra.mxu0 %v1495_v53 }
  0x34   :  { %1349 = vmatprep.subr.bf16.mxu0 %v1498_v56 }
  0x35   :  { %1370 = vmatpush3.bf16.msra.mxu1 %v1497_v55 }
  0x36   :  { %1371 = vmatprep.subr.bf16.mxu1 %v1500_v58 }
  0x37   :  { %1350 = vmatpush3.bf16.msra.mxu0 %v1499_v57 }
  0x38   :  { %1351 = vmatprep.subr.bf16.mxu0 %v1502_v60 }
  0x39   :  { %1372 = vmatpush3.bf16.msra.mxu1 %v1501_v59 }
  0x3a   :  { %1373 = vmatprep.subr.bf16.mxu1 %v1504_v62 }
  0x3b   :  { %1352 = vmatpush3.bf16.msra.mxu0 %v1503_v61 }
  0x3c   :  { %1353 = vmatprep.subr.bf16.mxu0 %v1506_v0 }
  0x3d   :  { %1374 = vmatpush3.bf16.msra.mxu1 %v1505_v63 }
  0x3e   :  { %1375 = vmatprep.subr.bf16.mxu1 %v1508_v2 }
  0x3f   :  { %1354 = vmatpush3.bf16.msra.mxu0 %v1507_v1 }
  0x40   :  { %1383 = vmatprep.subr.bf16.mxu0 %v1513_v6 }
  0x41   :  { %1376 = vmatpush3.bf16.msra.mxu1 %v1509_v3 }
  0x42   :  { %1004 = vmatmul.mubr.bf16.vlgmr.msra.gmra.mrb[4].mxu0 %v1510_v4  ;;  %1405 = vmatprep.subr.bf16.mxu1 %v1518_v10 }
  0x43   :  { %1384 = vmatpush3.bf16.msra.mxu0 %v1517_v9  ;;  %1085 = vmatprep.mubr.bf16.mxu0 %v1550_v41 }
  0x44   :  { %1045 = vmatmul.mubr.bf16.vlgmr.msra.gmra.mrb[4].mxu1 %v1514_v7  ;;  %1385 = vmatprep.subr.bf16.mxu0 %v1520_v12 }
  0x45   :  { %1406 = vmatpush3.bf16.msra.mxu1 %v1519_v11  ;;  %1126 = vmatprep.mubr.bf16.mxu1 %v1553_v44 }
  0x46   :  { %1407 = vmatprep.subr.bf16.mxu1 %v1522_v14 }
  0x47   :  { %1386 = vmatpush3.bf16.msra.mxu0 %v1521_v13 }
  0x48   :  { %1387 = vmatprep.subr.bf16.mxu0 %v1524_v16 }
  0x49   :  { %1408 = vmatpush3.bf16.msra.mxu1 %v1523_v15 }
  0x4a   :  { %1409 = vmatprep.subr.bf16.mxu1 %v1526_v18 }
  0x4b   :  { %1388 = vmatpush3.bf16.msra.mxu0 %v1525_v17 }
  0x4c   :  { %1389 = vmatprep.subr.bf16.mxu0 %v1528_v20 }
  0x4d   :  { %1410 = vmatpush3.bf16.msra.mxu1 %v1527_v19 }
  0x4e   :  { %1411 = vmatprep.subr.bf16.mxu1 %v1530_v22 }
  0x4f   :  { %1390 = vmatpush3.bf16.msra.mxu0 %v1529_v21 }
  0x50   :  { %1391 = vmatprep.subr.bf16.mxu0 %v1532_v24 }
  0x51   :  { %1412 = vmatpush3.bf16.msra.mxu1 %v1531_v23 }
  0x52   :  { %1413 = vmatprep.subr.bf16.mxu1 %v1534_v26 }
  0x53   :  { %1392 = vmatpush3.bf16.msra.mxu0 %v1533_v25 }
  0x54   :  { %1393 = vmatprep.subr.bf16.mxu0 %v1536_v28 }
  0x55   :  { %1414 = vmatpush3.bf16.msra.mxu1 %v1535_v27 }
  0x56   :  { %1415 = vmatprep.subr.bf16.mxu1 %v1538_v30 }
  0x57   :  { %1394 = vmatpush3.bf16.msra.mxu0 %v1537_v29 }
  0x58   :  { %1395 = vmatprep.subr.bf16.mxu0 %v1540_v32 }
  0x59   :  { %1416 = vmatpush3.bf16.msra.mxu1 %v1539_v31 }
  0x5a   :  { %1417 = vmatprep.subr.bf16.mxu1 %v1542_v34 }
  0x5b   :  { %1396 = vmatpush3.bf16.msra.mxu0 %v1541_v33 }
  0x5c   :  { %1397 = vmatprep.subr.bf16.mxu0 %v1544_v36 }
  0x5d   :  { %1418 = vmatpush3.bf16.msra.mxu1 %v1543_v35 }
  0x5e   :  { %1419 = vmatprep.subr.bf16.mxu1 %v1546_v38 }
  0x5f   :  { %1398 = vmatpush3.bf16.msra.mxu0 %v1545_v37 }
  0x60   :  { %1430 = vmatprep.subr.bf16.mxu0 %v1557_v42 }
  0x61   :  { %1420 = vmatpush3.bf16.msra.mxu1 %v1547_v39 }
  0x62   :  { %1086 = vmatmul.mubr.bf16.vlgmr.msra.gmra.mrb[8].mxu0 %v1548_v40 }
  0x63   :  { %1431 = vmatpush3.bf16.msra.mxu0 %v1554_v45  ;;  %1434 = vmatprep.mubr.msk.bf16.mxu0 %vm1558_vm0, %v1557_v42 }
  0x64   :  { %1127 = vmatmul.mubr.bf16.vlgmr.msra.gmra.mrb[8].mxu1 %v1551_v43  ;;  %1432 = vmatprep.subr.bf16.mxu0 %v1557_v42 }
  0x67   :  { %1433 = vmatpush3.bf16.msra.mxu0 %v1555_v46 }
  0x6a   :  { %1435 = vmatmul.mubr.msk.bf16.vlgmr.msra.gmra.mrb[12].mxu0 %vm885_vm1, %v1556_v47 }
  0xf5   :  { %v1311_v48 = vpop.f32.mrb[0].mxu0 }
  0xf6   :  { %v1312_v50 = vpop.f32.mrb[1].mxu0 }
  0xf7   :  { %v1313_v51 = vadd.f32 %v1312_v50, %v1311_v48  ;;  %v1314_v52 = vpop.f32.mrb[2].mxu0  ;;  %v1333_v53 = vpop.f32.mrb[0].mxu1 }
  0xf8   :  { %v1315_v54 = vpop.f32.mrb[3].mxu0  ;;  %v1334_v55 = vpop.f32.mrb[1].mxu1 }
  0xf9   :  { %v924_v56 = vadd.f32 %v1313_v51, %v1182_v49  ;;  %v1316_v57 = vadd.f32 %v1315_v54, %v1314_v52  ;;  %v1335_v58 = vadd.f32 %v1334_v55, %v1333_v53  ;;  %v1336_v59 = vpop.f32.mrb[2].mxu1 }
  0xfa   :  { %v1337_v60 = vpop.f32.mrb[3].mxu1 }
  0xfb   :  { %v927_v61 = vadd.f32 %v1316_v57, %v1182_v49  ;;  %v965_v62 = vadd.f32 %v1335_v58, %v924_v56  ;;  %v1338_v63 = vadd.f32 %v1337_v60, %v1336_v59 }
  0xfd   :  { %v968_v0 = vadd.f32 %v1338_v63, %v927_v61 }
 0x115   :  { %v1355_v1 = vpop.f32.mrb[4].mxu0 }
 0x116   :  { %v1356_v2 = vpop.f32.mrb[5].mxu0 }
 0x117   :  { %v1357_v3 = vadd.f32 %v1356_v2, %v1355_v1  ;;  %v1358_v4 = vpop.f32.mrb[6].mxu0  ;;  %v1377_v5 = vpop.f32.mrb[4].mxu1 }
 0x118   :  { %v1359_v6 = vpop.f32.mrb[7].mxu0  ;;  %v1378_v9 = vpop.f32.mrb[5].mxu1 }
 0x119   :  { %v1006_v7 = vadd.f32 %v1357_v3, %v965_v62  ;;  %v1360_v8 = vadd.f32 %v1359_v6, %v1358_v4  ;;  %v1379_v10 = vadd.f32 %v1378_v9, %v1377_v5  ;;  %v1380_v11 = vpop.f32.mrb[6].mxu1 }
 0x11a   :  { %v1381_v13 = vpop.f32.mrb[7].mxu1 }
 0x11b   :  { %v1009_v12 = vadd.f32 %v1360_v8, %v968_v0  ;;  %v1047_v14 = vadd.f32 %v1379_v10, %v1006_v7  ;;  %v1382_v15 = vadd.f32 %v1381_v13, %v1380_v11 }
 0x11d   :  { %v1050_v16 = vadd.f32 %v1382_v15, %v1009_v12 }
 0x135   :  { %v1399_v17 = vpop.f32.mrb[8].mxu0 }
 0x136   :  { %v1400_v18 = vpop.f32.mrb[9].mxu0 }
 0x137   :  { %v1421_v19 = vpop.f32.mrb[8].mxu1  ;;  %v1401_v20 = vadd.f32 %v1400_v18, %v1399_v17  ;;  %v1402_v21 = vpop.f32.mrb[10].mxu0 }
 0x138   :  { %v1422_v22 = vpop.f32.mrb[9].mxu1  ;;  %v1403_v24 = vpop.f32.mrb[11].mxu0 }
 0x139   :  { %v1423_v23 = vadd.f32 %v1422_v22, %v1421_v19  ;;  %v1424_v25 = vpop.f32.mrb[10].mxu1  ;;  %v1088_v26 = vadd.f32 %v1401_v20, %v1047_v14  ;;  %v1404_v27 = vadd.f32 %v1403_v24, %v1402_v21 }
 0x13a   :  { %v1425_v28 = vpop.f32.mrb[11].mxu1 }
 0x13b   :  { %v1426_v29 = vadd.f32 %v1425_v28, %v1424_v25  ;;  %v1091_v30 = vadd.f32 %v1404_v27, %v1050_v16  ;;  %v1129_v31 = vadd.f32 %v1423_v23, %v1088_v26 }
 0x13d   :  { %v1169_v32 = vpop.f32.mrb[12].mxu0  ;;  %v1132_v33 = vadd.f32 %v1426_v29, %v1091_v30 }
 0x13e   :  { %v1170_v34 = vadd.f32 %v1169_v32, %v1129_v31  ;;  %v1436_v35 = vpop.f32.mrb[13].mxu0 }
 0x13f   :  { %v1172_v36 = vpop.f32.mrb[14].mxu0 }
 0x140   :  { %1176 = vst [vmem:[%s1924_s3] sm:$0xff] %v1170_v34  ;;  %v1173_v37 = vadd.f32 %v1172_v36, %v1132_v33  ;;  %v1437_v38 = vpop.f32.mrb[15].mxu0 }
 0x142   :  { %1177 = vst [vmem:[%s1924_s3 + $0x8] sm:$0xff] %v1173_v37 }

</bundles_post_ra>
